<compile_context>
chip_gen: v7x
topology: tpu7x:2x2x1
jax: 0.10.0
libtpu: 0.0.40
codegen_flags: <defaults>
</compile_context>

<pallas_src>
import functools

import jax
import jax.numpy as jnp
from jax.experimental import pallas as pl
from jax.experimental.pallas import tpu as pltpu


def _round_up(v, m):
    return ((v + m - 1) // m) * m


def _default_num_partials():
    # 2 TensorCores per chip only on v7x; elsewhere the extra axis is pure overhead.
    try:
        kind = jax.devices()[0].device_kind.lower()
        return 2 if "v7" in kind else 1
    except Exception:
        return 1


def _point_mlp_max_kernel(x_ref, w1_ref, b1_ref, w2_ref, b2_ref, w3_ref, out_ref):
    """Per-point MLP (3 -> 64 -> 128 -> 1024, b3 hoisted) + running max over points.

    Grid: (partials, tiles).  out_ref is a (1, 8, 1024) partial-max block whose block
    index is constant along the inner (tile) axis, so it stays resident in VMEM and
    acts as the accumulator for this partial.
    """
    t = pl.program_id(1)

    @pl.when(t == 0)
    def _():
        out_ref[...] = jnp.full(out_ref.shape, -jnp.inf, dtype=out_ref.dtype)

    x = x_ref[...]                       # (tile_m, 3)  f32
    w1 = w1_ref[...]                     # (3, 64)      f32

    # Layer 1: K=3 -> cheaper as VPU broadcast multiply-adds than an MXU pass.
    h = (x[:, 0:1] * w1[0:1, :]
         + x[:, 1:2] * w1[1:2, :]
         + x[:, 2:3] * w1[2:3, :]
         + b1_ref[...])
    h = jnp.maximum(h, 0.0)              # relu1 (f32)

    # Layers 2 & 3 on the MXU: bf16 operands, f32 accumulation; bias/relu in f32.
    h = jnp.dot(h.astype(jnp.bfloat16), w2_ref[...],
                preferred_element_type=jnp.float32) + b2_ref[...]
    h = jnp.maximum(h, 0.0)              # relu2 (f32)
    # b3 is added once in the wrapper after the global max (exact identity).
    h = jnp.dot(h.astype(jnp.bfloat16), w3_ref[...],
                preferred_element_type=jnp.float32)        # (tile_m, 1024)

    # Pairwise-tree max fold of the point dimension down to 8 sublanes: purely
    # elementwise (VPU) vmax over statically sliced, sublane-aligned (8, 1024)
    # groups, log2(tile_m/8) dependency depth.  The final 8 -> 1 cross-sublane
    # reduce happens once in the wrapper.
    tm = h.shape[0]
    groups = [h[r * 8:(r + 1) * 8, :] for r in range(tm // 8)]
    while len(groups) > 1:
        nxt = [jnp.maximum(groups[i], groups[i + 1])
               for i in range(0, len(groups) - 1, 2)]
        if len(groups) % 2:
            nxt.append(groups[-1])
        groups = nxt
    part = groups[0]                     # (8, 1024)

    out_ref[...] = jnp.maximum(out_ref[...], part[None])


def basic_mlp_forward(x, params, *, tile_m=1024, num_partials=None):
    """x: (B, N, 3) float32 -> (3, 3) float32 (max pooled over all B*N points)."""
    (w1, b1, w2, b2, w3, b3, wf1, bf1, wf2, bf2) = params
    if num_partials is None:
        num_partials = _default_num_partials()

    x_flat = x.reshape(-1, 3).astype(jnp.float32)
    M = x_flat.shape[0]

    # Adapt the tile to small inputs; keep it a multiple of 8 (sublane width).
    tile_m = max(8, min(_round_up(int(tile_m), 8),
                        _round_up(pl.cdiv(M, num_partials), 8)))

    chunk = tile_m * num_partials
    m_pad = _round_up(M, chunk)
    if m_pad != M:
        # Pad with copies of an existing point: duplicates do not change the max.
        pad = jnp.broadcast_to(x_flat[0:1], (m_pad - M, 3))
        x_flat = jnp.concatenate([x_flat, pad], axis=0)

    tiles = m_pad // chunk
    grid = (num_partials, tiles)

    const = lambda c, t: (0, 0)

    # bf16 weights for the MXU layers; biases stay f32 (added on the f32 accumulator).
    w2b = w2.astype(jnp.bfloat16)
    w3b = w3.astype(jnp.bfloat16)

    partial_max = pl.pallas_call(
        _point_mlp_max_kernel,
        out_shape=jax.ShapeDtypeStruct((num_partials, 8, 1024), jnp.float32),
        grid_spec=pltpu.PrefetchScalarGridSpec(
            num_scalar_prefetch=0,
            grid=grid,
            in_specs=[
                pl.BlockSpec((tile_m, 3), lambda c, t: (c * tiles + t, 0)),  # x tile
                pl.BlockSpec((3, 64), const),        # W1
                pl.BlockSpec((1, 64), const),        # b1
                pl.BlockSpec((64, 128), const),      # W2 (bf16)
                pl.BlockSpec((1, 128), const),       # b2
                pl.BlockSpec((128, 1024), const),    # W3 (bf16)
            ],
            out_specs=pl.BlockSpec((1, 8, 1024), lambda c, t: (c, 0, 0)),
        ),
        compiler_params=pltpu.CompilerParams(
            # Outer (partials) axis parallel, inner axis is the running-max
            # reduction -> arbitrary.
            # TODO(synk): on v7x, verify via bundle dump that "parallel" actually
            # shards the partials axis across both TensorCores; otherwise switch
            # that axis to pltpu.CORE_PARALLEL.
            dimension_semantics=("parallel", "arbitrary"),
            # Room for the (tile_m, 1024) f32 layer-3 result at tile_m=1024 on
            # every generation (well under v7x's 64 MiB physical VMEM).
            vmem_limit_bytes=32 * 1024 * 1024,
        ),
    )(x_flat, w1, b1, w2b, b2, w3b)

    # Final 8->1 / partial->global max reduce (tiny, once), hoisted b3 bias add, and
    # the one-shot head MLP in plain JAX: a (1,1024)@(1024,512) matmul at M=1 runs
    # once and is free in XLA; keeping its weights out of the kernel frees VMEM.
    g = jnp.max(partial_max, axis=(0, 1))[None, :] + b3       # (1, 1024)
    f = jnp.maximum(g @ wf1 + bf1, 0.0)                       # fc1 + reluf1
    o = f @ wf2 + bf2                                         # fc2
    # NOTE: reluf2 is defined in __init__ but NOT applied in forward().
    return o.reshape(3, 3)


def init_params(key):
    """Deterministic init: weights (in, out) uniform(-1/sqrt(in), 1/sqrt(in))."""
    dims = [(3, 64), (64, 128), (128, 1024), (1024, 512), (512, 9)]
    params = []
    keys = jax.random.split(key, 2 * len(dims))
    for idx, (fan_in, fan_out) in enumerate(dims):
        bound = 1.0 / (fan_in ** 0.5)
        w = jax.random.uniform(keys[2 * idx], (fan_in, fan_out),
                               minval=-bound, maxval=bound, dtype=jnp.float32)
        b = jax.random.uniform(keys[2 * idx + 1], (1, fan_out),
                               minval=-bound, maxval=bound, dtype=jnp.float32)
        params += [w, b]
    return tuple(params)


def reference_forward(x, params):
    (w1, b1, w2, b2, w3, b3, wf1, bf1, wf2, bf2) = params
    h = x.reshape(-1, 3)
    h = jnp.maximum(h @ w1 + b1, 0.0)
    h = jnp.maximum(h @ w2 + b2, 0.0)
    h = h @ w3 + b3
    g = jnp.max(h, axis=0, keepdims=True)
    f = jnp.maximum(g @ wf1 + bf1, 0.0)
    o = f @ wf2 + bf2
    return o.reshape(3, 3)


if __name__ == "__main__":
    key = jax.random.PRNGKey(0)
    pkey, xkey = jax.random.split(key)
    params = init_params(pkey)

    # Small shapes consistent with the module: B=2, N=64 points per sample, xyz.
    B, N = 2, 64
    x = jax.random.normal(xkey, (B, N, 3), dtype=jnp.float32)

    fwd = jax.jit(functools.partial(basic_mlp_forward, tile_m=1024))
    out = jax.block_until_ready(fwd(x, params))

    ref = reference_forward(x, params)
    assert out.shape == (3, 3)
    # bf16 MXU matmuls (f32 accumulate) vs. the pure-f32 reference -> relaxed tol.
    assert jnp.allclose(out, ref, atol=2e-2, rtol=2e-2), (out, ref)

    print("KERNEL_OK")
</pallas_src>

<mosaic_0001>
module attributes {stable_mosaic.version = 11 : i64} {
  func.func @_point_mlp_max_kernel(%arg0: i32, %arg1: i32, %arg2: memref<128x3xf32, #tpu.memory_space<vmem>>, %arg3: memref<3x64xf32, #tpu.memory_space<vmem>>, %arg4: memref<1x64xf32, #tpu.memory_space<vmem>>, %arg5: memref<64x128xbf16, #tpu.memory_space<vmem>>, %arg6: memref<1x128xf32, #tpu.memory_space<vmem>>, %arg7: memref<128x1024xbf16, #tpu.memory_space<vmem>>, %arg8: memref<1x8x1024xf32, #tpu.memory_space<vmem>>) attributes {dimension_semantics = [#tpu.dimension_semantics<parallel>, #tpu.dimension_semantics<arbitrary>], iteration_bounds = array<i64: 1, 1>, scalar_prefetch = 0 : i64, scratch_operands = 0 : i64, tpu.core_type = #tpu.core_type<tc>, window_params = [{transform_indices = @transform_0, window_bounds = array<i64: 128, 3>}, {pipeline_mode = #tpu.pipeline_mode<synchronous>, transform_indices = @transform_1, window_bounds = array<i64: 3, 64>}, {pipeline_mode = #tpu.pipeline_mode<synchronous>, transform_indices = @transform_2, window_bounds = array<i64: 1, 64>}, {pipeline_mode = #tpu.pipeline_mode<synchronous>, transform_indices = @transform_3, window_bounds = array<i64: 64, 128>}, {pipeline_mode = #tpu.pipeline_mode<synchronous>, transform_indices = @transform_4, window_bounds = array<i64: 1, 128>}, {pipeline_mode = #tpu.pipeline_mode<synchronous>, transform_indices = @transform_5, window_bounds = array<i64: 128, 1024>}, {transform_indices = @transform_6, window_bounds = array<i64: 1, 8, 1024>}]} {
    %c0_i32 = arith.constant 0 : i32
    %0 = arith.cmpi eq, %arg1, %c0_i32 : i32
    %1 = arith.extui %0 : i1 to i32
    %c0_i32_0 = arith.constant 0 : i32
    %2 = arith.cmpi ne, %1, %c0_i32_0 : i32
    scf.if %2 {
      %cst_21 = arith.constant 0xFF800000 : f32
      %73 = vector.broadcast %cst_21 : f32 to vector<1x8x1024xf32>
      %c0_22 = arith.constant 0 : index
      %c0_23 = arith.constant 0 : index
      %c0_24 = arith.constant 0 : index
      %74 = vector.load %arg8[%c0_22, %c0_23, %c0_24] : memref<1x8x1024xf32, #tpu.memory_space<vmem>>, vector<1x8x1024xf32>
      tpu.vector_store %arg8[%c0_22, %c0_23, %c0_24], %73 {strides = array<i32>} : memref<1x8x1024xf32, #tpu.memory_space<vmem>>, vector<1x8x1024xf32>,
    } else {
    }
    %c0 = arith.constant 0 : index
    %c0_1 = arith.constant 0 : index
    %3 = vector.load %arg2[%c0, %c0_1] : memref<128x3xf32, #tpu.memory_space<vmem>>, vector<128x3xf32>
    %c0_2 = arith.constant 0 : index
    %c0_3 = arith.constant 0 : index
    %4 = vector.load %arg3[%c0_2, %c0_3] : memref<3x64xf32, #tpu.memory_space<vmem>>, vector<3x64xf32>
    %5 = vector.extract_strided_slice %3 {offsets = [0, 0], sizes = [128, 1], strides = [1, 1]} : vector<128x3xf32> to vector<128x1xf32>
    %6 = vector.extract_strided_slice %4 {offsets = [0, 0], sizes = [1, 64], strides = [1, 1]} : vector<3x64xf32> to vector<1x64xf32>
    %7 = vector.broadcast %5 : vector<128x1xf32> to vector<128x64xf32>
    %8 = vector.broadcast %6 : vector<1x64xf32> to vector<128x64xf32>
    %9 = arith.mulf %7, %8 : vector<128x64xf32>
    %10 = vector.extract_strided_slice %3 {offsets = [0, 1], sizes = [128, 1], strides = [1, 1]} : vector<128x3xf32> to vector<128x1xf32>
    %11 = vector.extract_strided_slice %4 {offsets = [1, 0], sizes = [1, 64], strides = [1, 1]} : vector<3x64xf32> to vector<1x64xf32>
    %12 = vector.broadcast %10 : vector<128x1xf32> to vector<128x64xf32>
    %13 = vector.broadcast %11 : vector<1x64xf32> to vector<128x64xf32>
    %14 = arith.mulf %12, %13 : vector<128x64xf32>
    %15 = arith.addf %9, %14 : vector<128x64xf32>
    %16 = vector.extract_strided_slice %3 {offsets = [0, 2], sizes = [128, 1], strides = [1, 1]} : vector<128x3xf32> to vector<128x1xf32>
    %17 = vector.extract_strided_slice %4 {offsets = [2, 0], sizes = [1, 64], strides = [1, 1]} : vector<3x64xf32> to vector<1x64xf32>
    %18 = vector.broadcast %16 : vector<128x1xf32> to vector<128x64xf32>
    %19 = vector.broadcast %17 : vector<1x64xf32> to vector<128x64xf32>
    %20 = arith.mulf %18, %19 : vector<128x64xf32>
    %21 = arith.addf %15, %20 : vector<128x64xf32>
    %c0_4 = arith.constant 0 : index
    %c0_5 = arith.constant 0 : index
    %22 = vector.load %arg4[%c0_4, %c0_5] : memref<1x64xf32, #tpu.memory_space<vmem>>, vector<1x64xf32>
    %23 = vector.broadcast %22 : vector<1x64xf32> to vector<128x64xf32>
    %24 = arith.addf %21, %23 : vector<128x64xf32>
    %cst = arith.constant 0.000000e+00 : f32
    %25 = vector.broadcast %cst : f32 to vector<128x64xf32>
    %26 = arith.maximumf %24, %25 : vector<128x64xf32>
    %27 = arith.truncf %26 : vector<128x64xf32> to vector<128x64xbf16>
    %c0_6 = arith.constant 0 : index
    %c0_7 = arith.constant 0 : index
    %28 = vector.load %arg5[%c0_6, %c0_7] : memref<64x128xbf16, #tpu.memory_space<vmem>>, vector<64x128xbf16>
    %cst_8 = arith.constant dense<0.000000e+00> : vector<128x128xf32>
    %29 = tpu.matmul %27, %28, %cst_8 {dimension_numbers = #tpu.dot_dimension_numbers<[1], [0], [0], [1], [0, 0, 1, 1], [], []>} : vector<128x64xbf16>, vector<64x128xbf16>, vector<128x128xf32> -> vector<128x128xf32>
    %c0_9 = arith.constant 0 : index
    %c0_10 = arith.constant 0 : index
    %30 = vector.load %arg6[%c0_9, %c0_10] : memref<1x128xf32, #tpu.memory_space<vmem>>, vector<1x128xf32>
    %31 = vector.broadcast %30 : vector<1x128xf32> to vector<128x128xf32>
    %32 = arith.addf %29, %31 : vector<128x128xf32>
    %cst_11 = arith.constant 0.000000e+00 : f32
    %33 = vector.broadcast %cst_11 : f32 to vector<128x128xf32>
    %34 = arith.maximumf %32, %33 : vector<128x128xf32>
    %35 = arith.truncf %34 : vector<128x128xf32> to vector<128x128xbf16>
    %c0_12 = arith.constant 0 : index
    %c0_13 = arith.constant 0 : index
    %36 = vector.load %arg7[%c0_12, %c0_13] : memref<128x1024xbf16, #tpu.memory_space<vmem>>, vector<128x1024xbf16>
    %cst_14 = arith.constant dense<0.000000e+00> : vector<128x1024xf32>
    %37 = tpu.matmul %35, %36, %cst_14 {dimension_numbers = #tpu.dot_dimension_numbers<[1], [0], [0], [1], [0, 0, 1, 1], [], []>} : vector<128x128xbf16>, vector<128x1024xbf16>, vector<128x1024xf32> -> vector<128x1024xf32>
    %38 = vector.extract_strided_slice %37 {offsets = [0, 0], sizes = [8, 1024], strides = [1, 1]} : vector<128x1024xf32> to vector<8x1024xf32>
    %39 = vector.extract_strided_slice %37 {offsets = [8, 0], sizes = [8, 1024], strides = [1, 1]} : vector<128x1024xf32> to vector<8x1024xf32>
    %40 = vector.extract_strided_slice %37 {offsets = [16, 0], sizes = [8, 1024], strides = [1, 1]} : vector<128x1024xf32> to vector<8x1024xf32>
    %41 = vector.extract_strided_slice %37 {offsets = [24, 0], sizes = [8, 1024], strides = [1, 1]} : vector<128x1024xf32> to vector<8x1024xf32>
    %42 = vector.extract_strided_slice %37 {offsets = [32, 0], sizes = [8, 1024], strides = [1, 1]} : vector<128x1024xf32> to vector<8x1024xf32>
    %43 = vector.extract_strided_slice %37 {offsets = [40, 0], sizes = [8, 1024], strides = [1, 1]} : vector<128x1024xf32> to vector<8x1024xf32>
    %44 = vector.extract_strided_slice %37 {offsets = [48, 0], sizes = [8, 1024], strides = [1, 1]} : vector<128x1024xf32> to vector<8x1024xf32>
    %45 = vector.extract_strided_slice %37 {offsets = [56, 0], sizes = [8, 1024], strides = [1, 1]} : vector<128x1024xf32> to vector<8x1024xf32>
    %46 = vector.extract_strided_slice %37 {offsets = [64, 0], sizes = [8, 1024], strides = [1, 1]} : vector<128x1024xf32> to vector<8x1024xf32>
    %47 = vector.extract_strided_slice %37 {offsets = [72, 0], sizes = [8, 1024], strides = [1, 1]} : vector<128x1024xf32> to vector<8x1024xf32>
    %48 = vector.extract_strided_slice %37 {offsets = [80, 0], sizes = [8, 1024], strides = [1, 1]} : vector<128x1024xf32> to vector<8x1024xf32>
    %49 = vector.extract_strided_slice %37 {offsets = [88, 0], sizes = [8, 1024], strides = [1, 1]} : vector<128x1024xf32> to vector<8x1024xf32>
    %50 = vector.extract_strided_slice %37 {offsets = [96, 0], sizes = [8, 1024], strides = [1, 1]} : vector<128x1024xf32> to vector<8x1024xf32>
    %51 = vector.extract_strided_slice %37 {offsets = [104, 0], sizes = [8, 1024], strides = [1, 1]} : vector<128x1024xf32> to vector<8x1024xf32>
    %52 = vector.extract_strided_slice %37 {offsets = [112, 0], sizes = [8, 1024], strides = [1, 1]} : vector<128x1024xf32> to vector<8x1024xf32>
    %53 = vector.extract_strided_slice %37 {offsets = [120, 0], sizes = [8, 1024], strides = [1, 1]} : vector<128x1024xf32> to vector<8x1024xf32>
    %54 = arith.maximumf %38, %39 : vector<8x1024xf32>
    %55 = arith.maximumf %40, %41 : vector<8x1024xf32>
    %56 = arith.maximumf %42, %43 : vector<8x1024xf32>
    %57 = arith.maximumf %44, %45 : vector<8x1024xf32>
    %58 = arith.maximumf %46, %47 : vector<8x1024xf32>
    %59 = arith.maximumf %48, %49 : vector<8x1024xf32>
    %60 = arith.maximumf %50, %51 : vector<8x1024xf32>
    %61 = arith.maximumf %52, %53 : vector<8x1024xf32>
    %62 = arith.maximumf %54, %55 : vector<8x1024xf32>
    %63 = arith.maximumf %56, %57 : vector<8x1024xf32>
    %64 = arith.maximumf %58, %59 : vector<8x1024xf32>
    %65 = arith.maximumf %60, %61 : vector<8x1024xf32>
    %66 = arith.maximumf %62, %63 : vector<8x1024xf32>
    %67 = arith.maximumf %64, %65 : vector<8x1024xf32>
    %68 = arith.maximumf %66, %67 : vector<8x1024xf32>
    %c0_15 = arith.constant 0 : index
    %c0_16 = arith.constant 0 : index
    %c0_17 = arith.constant 0 : index
    %69 = vector.load %arg8[%c0_15, %c0_16, %c0_17] : memref<1x8x1024xf32, #tpu.memory_space<vmem>>, vector<1x8x1024xf32>
    %70 = vector.shape_cast %68 : vector<8x1024xf32> to vector<1x8x1024xf32>
    %71 = arith.maximumf %69, %70 : vector<1x8x1024xf32>
    %c0_18 = arith.constant 0 : index
    %c0_19 = arith.constant 0 : index
    %c0_20 = arith.constant 0 : index
    %72 = vector.load %arg8[%c0_18, %c0_19, %c0_20] : memref<1x8x1024xf32, #tpu.memory_space<vmem>>, vector<1x8x1024xf32>
    tpu.vector_store %arg8[%c0_18, %c0_19, %c0_20], %71 {strides = array<i32>} : memref<1x8x1024xf32, #tpu.memory_space<vmem>>, vector<1x8x1024xf32>,
    return
  }
  func.func @transform_0(%arg0: i32, %arg1: i32) -> (i32, i32) {
    %c1_i32 = arith.constant 1 : i32
    %0 = arith.muli %arg0, %c1_i32 : i32
    %1 = arith.addi %0, %arg1 : i32
    %c0_i32 = arith.constant 0 : i32
    %c0_i32_0 = arith.constant 0 : i32
    return %1, %c0_i32 : i32, i32
  }
  func.func @transform_1(%arg0: i32, %arg1: i32) -> (i32, i32) {
    %c0_i32 = arith.constant 0 : i32
    %c0_i32_0 = arith.constant 0 : i32
    %c0_i32_1 = arith.constant 0 : i32
    return %c0_i32, %c0_i32_0 : i32, i32
  }
  func.func @transform_2(%arg0: i32, %arg1: i32) -> (i32, i32) {
    %c0_i32 = arith.constant 0 : i32
    %c0_i32_0 = arith.constant 0 : i32
    %c0_i32_1 = arith.constant 0 : i32
    return %c0_i32, %c0_i32_0 : i32, i32
  }
  func.func @transform_3(%arg0: i32, %arg1: i32) -> (i32, i32) {
    %c0_i32 = arith.constant 0 : i32
    %c0_i32_0 = arith.constant 0 : i32
    %c0_i32_1 = arith.constant 0 : i32
    return %c0_i32, %c0_i32_0 : i32, i32
  }
  func.func @transform_4(%arg0: i32, %arg1: i32) -> (i32, i32) {
    %c0_i32 = arith.constant 0 : i32
    %c0_i32_0 = arith.constant 0 : i32
    %c0_i32_1 = arith.constant 0 : i32
    return %c0_i32, %c0_i32_0 : i32, i32
  }
  func.func @transform_5(%arg0: i32, %arg1: i32) -> (i32, i32) {
    %c0_i32 = arith.constant 0 : i32
    %c0_i32_0 = arith.constant 0 : i32
    %c0_i32_1 = arith.constant 0 : i32
    return %c0_i32, %c0_i32_0 : i32, i32
  }
  func.func @transform_6(%arg0: i32, %arg1: i32) -> (i32, i32, i32) {
    %c0_i32 = arith.constant 0 : i32
    %c0_i32_0 = arith.constant 0 : i32
    %c0_i32_1 = arith.constant 0 : i32
    return %arg0, %c0_i32, %c0_i32_0 : i32, i32, i32
  }
}

</mosaic_0001>

<bundles_post_ra>
// kernel: basic_mlp_forward.1
= control target key start
LH: loop header
LB: loop body
LE: loop exit
PB: predicated region body
PF: predicated region fallthrough
CT: control target
= control target key end

     0   :  { %11 = vsyncpa [#allocation3], 0  ;;  %s2549_s0 = inlined_call_operand.vmem [shape: f32[128,3], index: 0, kind: input, shape index: {}]   ;;  %s2550_s1 = inlined_call_operand.hbm [shape: f32[3,64], index: 1, kind: input, shape index: {}]   ;;  %s2551_s2 = inlined_call_operand.hbm [shape: f32[1,64], index: 2, kind: input, shape index: {}]   ;;  %s2552_s3 = inlined_call_operand.vmem [shape: bf16[64,128], index: 3, kind: input, shape index: {}]   ;;  %s2553_s4 = inlined_call_operand.hbm [shape: f32[1,128], index: 4, kind: input, shape index: {}]   ;;  %s2554_s5 = inlined_call_operand.vmem [shape: bf16[128,1024], index: 5, kind: input, shape index: {}]   ;;  %s2555_s6 = inlined_call_operand.vmem [shape: f32[1,8,1024], index: 6, kind: output, shape index: {}]  }
   0x1   :  { %12 = vsyncpa [#allocation5], 0  ;;  %s1870_s21 = smov [#allocation4]   ;;  %s1871_s23 = smov [#allocation2]  }
   0x2   :  { %s39_s22 = sshll.u32 %s1870_s21, 4  ;;  %s29_s24 = sshll.u32 %s1871_s23, 4  ;;  %s40_s22 = int_to_ptr.vmem [resolvable:$true] %s39_s22  ;;  %s30_s24 = int_to_ptr.vmem [resolvable:$true] %s29_s24 }
   0x3   :  { %s1800_s27 = scalar_lea.hbm %s2551_s2, 16 }
   0x4   :  { %p1801_p0 = scmp.ne.s32.totalorder %s2551_s2, %s1800_s27  ;;  %p1804_p1 = scmp.lt.u32.totalorder %s1800_s27, %s2551_s2 }
   0x6   :  { %p1806_p2 = pnand %p1804_p1, %p1801_p0 }
   0x8   :  { %1809 = shalt.err (!%p1806_p2)
}
   0x9   :  { %s1810_s8 = scalar_lea.vmem %s40_s22, 16  ;;  %s1814_s9 = scalar_lea.vmem %s40_s22, 32 }
   0xa   :  { %p1811_p3 = scmp.ne.s32.totalorder %s40_s22, %s1810_s8  ;;  %p1815_p4 = scmp.lt.s32.totalorder %s40_s22, %s40_s22 }
   0xb   :  { %p1816_p5 = scmp.lt.s32.totalorder %s1814_s9, %s1810_s8 }
   0xd   :  { %p1817_p6 = por %p1816_p5, %p1815_p4 }
   0xf   :  { %p1818_p7 = pnand %p1817_p6, %p1811_p3 }
  0x11   :  { %1821 = shalt.err (!%p1818_p7)
}
  0x12   :  { %42 = dma.hbm_to_vmem [thread:$0]  %s2551_s2, 16, %s40_s22, [#allocation5]  }
  0x13   :  { %s1822_s14 = scalar_lea.hbm %s2550_s1, 64 }
  0x14   :  { %p1823_p8 = scmp.ne.s32.totalorder %s2550_s1, %s1822_s14  ;;  %p1826_p9 = scmp.lt.u32.totalorder %s1822_s14, %s2550_s1 }
  0x16   :  { %p1828_p10 = pnand %p1826_p9, %p1823_p8 }
  0x18   :  { %1831 = shalt.err (!%p1828_p10)
}
  0x19   :  { %s1832_s19 = scalar_lea.vmem %s30_s24, 64  ;;  %p1837_p12 = scmp.lt.s32.totalorder %s30_s24, %s30_s24 }
  0x1a   :  { %p1833_p11 = scmp.ne.s32.totalorder %s30_s24, %s1832_s19  ;;  %p1838_p13 = scmp.lt.s32.totalorder %s1832_s19, %s1832_s19 }
  0x1c   :  { %p1839_p0 = por %p1838_p13, %p1837_p12 }
  0x1e   :  { %p1840_p1 = pnand %p1839_p0, %p1833_p11 }
  0x20   :  { %1843 = shalt.err (!%p1840_p1)
}
  0x21   :  { %32 = dma.hbm_to_vmem [thread:$0]  %s2550_s1, 64, %s30_s24, [#allocation3]  }
  0x22   :  { %s1872_s21 = smov [#allocation6]   ;;  %s1844_s26 = scalar_lea.hbm %s2553_s4, 16 }
  0x23   :  { %s51_s22 = sshll.u32 %s1872_s21, 4  ;;  %p1845_p2 = scmp.ne.s32.totalorder %s2553_s4, %s1844_s26  ;;  %s52_s22 = int_to_ptr.vmem [resolvable:$true] %s51_s22 }
  0x24   :  { %p1848_p3 = scmp.lt.u32.totalorder %s1844_s26, %s2553_s4 }
  0x26   :  { %p1850_p4 = pnand %p1848_p3, %p1845_p2 }
  0x28   :  { %1853 = shalt.err (!%p1850_p4)
}
  0x29   :  { %s1854_s7 = scalar_lea.vmem %s52_s22, 16  ;;  %s1858_s1 = scalar_lea.vmem %s52_s22, 32 }
  0x2a   :  { %p1855_p5 = scmp.ne.s32.totalorder %s52_s22, %s1854_s7  ;;  %p1859_p6 = scmp.lt.s32.totalorder %s52_s22, %s52_s22 }
  0x2b   :  { %p1860_p7 = scmp.lt.s32.totalorder %s1858_s1, %s1854_s7 }
  0x2d   :  { %p1861_p8 = por %p1860_p7, %p1859_p6 }
  0x2f   :  { %p1862_p9 = pnand %p1861_p8, %p1855_p5 }
  0x31   :  { %1865 = shalt.err (!%p1862_p9)
}
  0x32   :  { %54 = dma.hbm_to_vmem [thread:$0]  %s2553_s4, 16, %s52_s22, [#allocation5]  }
  0x33   :  { %1866 = dma.done.wait [#allocation3], 64  }
  0x34   :  { %1867 = vsyncadd [#allocation3], 4294967232 }
  0x35   :  { %1868 = dma.done.wait [#allocation5], 32  }
  0x36   :  { %1869 = vsyncadd [#allocation5], 4294967264  ;;  %v1873_v0 = vmov 1   ;;  %v1874_v1 = vmov 0   ;;  %v93_v2 = vld [vmem:[%s2549_s0] sm:$0xff]  ;;  %v94_v3 = vld [vmem:[%s2549_s0 + $0x8] sm:$0xff]  ;;  %v190_v25 = vlaneseq }
  0x37   :  { %1772 = vset.pattern.permute.xlu1 %v1873_v0  ;;  %1771 = vset.pattern.permute.xlu0 %v1874_v1  ;;  %v95_v4 = vld [vmem:[%s2549_s0 + $0x10] sm:$0xff]  ;;  %v96_v5 = vld [vmem:[%s2549_s0 + $0x18] sm:$0xff]  ;;  %v98_v6 = vld [vmem:[%s2549_s0 + $0x28] sm:$0xff]  ;;  %v1875_v7 = vmov 2   ;;  %vm496_vm0 = vcmask 523264  }
  0x38   :  { %1058 = vmatprep.mubr.bf16.mxu1 %v1874_v1  ;;  %211 = vperm.xlu1 %1772, %v93_v2   ;;  %v99_v8 = vld [vmem:[%s2549_s0 + $0x30] sm:$0xff]  ;;  %v1796_v9 = vld [vmem:[%s2552_s3] sm:$0xff]   ;;  %v1797_v10 = vld [vmem:[%s2552_s3 + $0x8] sm:$0xff]   ;;  %v191_v28 = vshrl.u32 %v190_v25, 7 }
  0x39   :  { %112 = vperm.xlu0 %1771, %v93_v2   ;;  %1724 = vmatprep.subr.bf16.mxu0 %v1796_v9  ;;  %v97_v11 = vld [vmem:[%s2549_s0 + $0x20] sm:$0xff]  ;;  %v1798_v12 = vld [vmem:[%s2552_s3 + $0x10] sm:$0xff]   ;;  %v100_v13 = vld [vmem:[%s2549_s0 + $0x38] sm:$0xff] }
  0x3a   :  { %1725 = vmatpush3.bf16.msra.mxu0 %v1796_v9  ;;  %v1799_v14 = vld [vmem:[%s2552_s3 + $0x18] sm:$0xff]   ;;  %v102_v15 = vld [vmem:[%s2549_s0 + $0x48] sm:$0xff]  ;;  %v103_v16 = vld [vmem:[%s2549_s0 + $0x50] sm:$0xff]  ;;  %v276_v31 = vsub.s32 1, %v191_v28  ;;  %v192_v32 = vsub.s32 0, %v191_v28  ;;  %v376_v35 = vsub.s32 2, %v191_v28 }
  0x3b   :  { %1726 = vmatprep.subr.bf16.mxu0 %v1797_v10  ;;  %v105_v17 = vld [vmem:[%s2549_s0 + $0x60] sm:$0xff]  ;;  %v106_v18 = vld [vmem:[%s2549_s0 + $0x68] sm:$0xff]  ;;  %v107_v20 = vld [vmem:[%s2549_s0 + $0x70] sm:$0xff] }
  0x3c   :  { %215 = vperm.xlu1 %1772, %v94_v3   ;;  %v101_v19 = vld [vmem:[%s2549_s0 + $0x40] sm:$0xff]  ;;  %v104_v21 = vld [vmem:[%s2549_s0 + $0x58] sm:$0xff]  ;;  %v2042_v38 = vld [vmem:[%s2554_s5 + $0x8] sm:$0xff] }
  0x3d   :  { %117 = vperm.xlu0 %1771, %v94_v3   ;;  %v108_v22 = vld [vmem:[%s2549_s0 + $0x78] sm:$0xff]  ;;  %v109_v33 = vld [vmem:[#allocation2] sm:$0x7]  ;;  %v2047_v41 = vld [vmem:[%s2554_s5 + $0x28] sm:$0xff] }
  0x3e   :  { %1727 = vmatpush3.bf16.msra.mxu0 %v1797_v10  ;;  %v642_v36 = vld [vmem:[%s2554_s5] sm:$0xff]  ;;  %v2055_v45 = vrot.slane %v109_v33, %v276_v31  ;;  %v2057_v46 = vrot.slane %v109_v33, %v192_v32  ;;  %v1651_v47 = vcombine.high %v2042_v38, %v2047_v41  ;;  %v2069_v52 = vrot.slane %v109_v33, %v376_v35 }
  0x3f   :  { %1728 = vmatprep.subr.bf16.mxu0 %v1798_v12  ;;  %v646_v37 = vld [vmem:[%s2554_s5 + $0x20] sm:$0xff] }
  0x40   :  { %1773 = vset.pattern.permute.xlu1 %v1874_v1  ;;  %v1649_v40 = vcombine.high %v642_v36, %v646_v37  ;;  %v1648_v42 = vcombine.low %v642_v36, %v646_v37  ;;  %v650_v43 = vld [vmem:[%s2554_s5 + $0x40] sm:$0xff] }
  0x41   :  { %122 = vperm.xlu0 %1771, %v95_v4   ;;  %127 = vperm.xlu1 %1773, %v96_v5   ;;  %v654_v44 = vld [vmem:[%s2554_s5 + $0x60] sm:$0xff] }
  0x42   :  { %1729 = vmatpush3.bf16.msra.mxu0 %v1798_v12  ;;  %v1657_v48 = vcombine.high %v650_v43, %v654_v44  ;;  %v658_v49 = vld [vmem:[%s2554_s5 + $0x80] sm:$0xff]  ;;  %1026 = vmatprep.subr.bf16.mxu1 %v1649_v40  ;;  %v1656_v53 = vcombine.low %v650_v43, %v654_v44  ;;  %v655_v40 = vld [vmem:[%s2554_s5 + $0x68] sm:$0xff] }
  0x43   :  { %1730 = vmatprep.subr.bf16.mxu0 %v1799_v14  ;;  %v662_v50 = vld [vmem:[%s2554_s5 + $0xa0] sm:$0xff]  ;;  %1027 = vmatpush1.bf16.msra.mxu1 %v1648_v42 }
  0x44   :  { %1028 = vmatprep.subr.bf16.mxu1 %v1657_v48  ;;  %v1665_v56 = vcombine.high %v658_v49, %v662_v50  ;;  %v666_v60 = vld [vmem:[%s2554_s5 + $0xc0] sm:$0xff] }
  0x45   :  { %1774 = vset.pattern.permute.xlu0 %v1873_v0  ;;  %1775 = vset.pattern.permute.xlu1 %v1873_v0  ;;  %v670_v61 = vld [vmem:[%s2554_s5 + $0xe0] sm:$0xff] }
  0x46   :  { %219 = vperm.xlu0 %1774, %v95_v4   ;;  %223 = vperm.xlu1 %1775, %v96_v5   ;;  %v678_v9 = vld [vmem:[%s2554_s5 + $0x120] sm:$0xff] }
  0x47   :  { %1731 = vmatpush3.bf16.msra.mxu0 %v1799_v14  ;;  %1029 = vmatpush1.bf16.msra.mxu1 %v1656_v53 }
  0x48   :  { %1139 = vmatprep.subr.bf16.mxu0 %v1651_v47  ;;  %1030 = vmatprep.subr.bf16.mxu1 %v1665_v56  ;;  %v663_v56 = vld [vmem:[%s2554_s5 + $0xa8] sm:$0xff] }
  0x4a   :  { %231 = vperm.xlu0 %1774, %v98_v6   ;;  %1776 = vset.pattern.permute.xlu1 %v1875_v7 }
  0x4b   :  { %311 = vperm.xlu1 %1776, %v93_v2  }
  0x4e   :  { %235 = vperm.xlu0 %1774, %v99_v8  }
  0x4f   :  { %319 = vperm.xlu1 %1776, %v95_v4  }
  0x52   :  { %1780 = vset.pattern.permute.xlu0 %v1875_v7 }
  0x53   :  { %315 = vperm.xlu0 %1780, %v94_v3   ;;  %323 = vperm.xlu1 %1776, %v96_v5   ;;  %v1673_v3 = vcombine.high %v666_v60, %v670_v61 }
  0x57   :  { %327 = vperm.xlu0 %1780, %v97_v11   ;;  %1777 = vset.pattern.permute.xlu1 %v1874_v1 }
  0x58   :  { %137 = vperm.xlu1 %1777, %v98_v6  }
  0x5b   :  { %339 = vperm.xlu0 %1780, %v100_v13  }
  0x5c   :  { %1778 = vset.pattern.permute.xlu1 %v1873_v0 }
  0x5d   :  { %227 = vperm.xlu1 %1778, %v97_v11  }
  0x5f   :  { %347 = vperm.xlu0 %1780, %v102_v15  }
  0x61   :  { %1779 = vset.pattern.permute.xlu1 %v1874_v1 }
  0x62   :  { %142 = vperm.xlu1 %1779, %v99_v8  }
  0x63   :  { %1788 = vset.pattern.permute.xlu0 %v1874_v1 }
  0x64   :  { %132 = vperm.xlu0 %1788, %v97_v11  }
  0x66   :  { %147 = vperm.xlu1 %1779, %v100_v13  }
  0x68   :  { %157 = vperm.xlu0 %1788, %v102_v15  }
  0x6a   :  { %1781 = vset.pattern.permute.xlu1 %v1873_v0 }
  0x6b   :  { %239 = vperm.xlu1 %1781, %v100_v13   ;;  %v1672_v13 = vcombine.low %v666_v60, %v670_v61 }
  0x6c   :  { %162 = vperm.xlu0 %1788, %v103_v16  }
  0x6f   :  { %1782 = vset.pattern.permute.xlu1 %v1875_v7 }
  0x70   :  { %172 = vperm.xlu0 %1788, %v105_v17   ;;  %331 = vperm.xlu1 %1782, %v98_v6  }
  0x74   :  { %1789 = vset.pattern.permute.xlu0 %v1873_v0  ;;  %335 = vperm.xlu1 %1782, %v99_v8   ;;  %v674_v8 = vld [vmem:[%s2554_s5 + $0x100] sm:$0xff] }
  0x75   :  { %251 = vperm.xlu0 %1789, %v103_v16   ;;  %v1680_v28 = vcombine.low %v674_v8, %v678_v9 }
  0x78   :  { %1783 = vset.pattern.permute.xlu1 %v1874_v1 }
  0x79   :  { %263 = vperm.xlu0 %1789, %v106_v18   ;;  %152 = vperm.xlu1 %1783, %v101_v19  }
  0x7d   :  { %267 = vperm.xlu0 %1789, %v107_v20   ;;  %1784 = vset.pattern.permute.xlu1 %v1873_v0 }
  0x7e   :  { %243 = vperm.xlu1 %1784, %v101_v19  }
  0x81   :  { %1794 = vset.pattern.permute.xlu0 %v1875_v7 }
  0x82   :  { %359 = vperm.xlu0 %1794, %v105_v17   ;;  %247 = vperm.xlu1 %1784, %v102_v15   ;;  %v2095_v15 = vld [vmem:[#allocation4] ss:$0 sm:$0xff] }
  0x86   :  { %371 = vperm.xlu0 %1794, %v108_v22   ;;  %1785 = vset.pattern.permute.xlu1 %v1874_v1 }
  0x87   :  { %167 = vperm.xlu1 %1785, %v104_v21  }
  0x8b   :  { %1786 = vset.pattern.permute.xlu1 %v1873_v0 }
  0x8c   :  { %255 = vperm.xlu1 %1786, %v104_v21  }
  0x90   :  { %1787 = vset.pattern.permute.xlu1 %v1875_v7 }
  0x91   :  { %343 = vperm.xlu1 %1787, %v101_v19  }
  0x95   :  { %351 = vperm.xlu1 %1787, %v103_v16  }
  0x99   :  { %355 = vperm.xlu1 %1787, %v104_v21  }
  0x9d   :  { %1790 = vset.pattern.permute.xlu1 %v1874_v1 }
  0x9e   :  { %177 = vperm.xlu1 %1790, %v106_v18  }
  0xa2   :  { %1791 = vset.pattern.permute.xlu1 %v1873_v0 }
  0xa3   :  { %259 = vperm.xlu1 %1791, %v105_v17  }
  0xa7   :  { %1792 = vset.pattern.permute.xlu1 %v1874_v1 }
  0xa8   :  { %182 = vperm.xlu1 %1792, %v107_v20  }
  0xac   :  { %187 = vperm.xlu1 %1792, %v108_v22  }
  0xb0   :  { %1793 = vset.pattern.permute.xlu1 %v1873_v0  ;;  %v1664_v0 = vcombine.low %v658_v49, %v662_v50  ;;  %v1650_v49 = vcombine.low %v2042_v38, %v2047_v41 }
  0xb1   :  { %271 = vperm.xlu1 %1793, %v108_v22   ;;  %v682_v22 = vld [vmem:[%s2554_s5 + $0x140] sm:$0xff] }
  0xb2   :  { %1031 = vmatpush1.bf16.msra.mxu1 %v1664_v0 }
  0xb3   :  { %1032 = vmatprep.subr.bf16.mxu1 %v1673_v3  ;;  %v679_v3 = vld [vmem:[%s2554_s5 + $0x128] sm:$0xff] }
  0xb5   :  { %1795 = vset.pattern.permute.xlu1 %v1875_v7 }
  0xb6   :  { %363 = vperm.xlu1 %1795, %v106_v18   ;;  %v1681_v18 = vcombine.high %v674_v8, %v678_v9  ;;  %1033 = vmatpush1.bf16.msra.mxu1 %v1672_v13  ;;  %v683_v9 = vld [vmem:[%s2554_s5 + $0x148] sm:$0xff] }
  0xb7   :  { %v212_v23 = vpop.permute.xlu1 %211 }
  0xb8   :  { %v113_v24 = vpop.permute.xlu0 %112  ;;  %v278_v57 = vmul.f32 %v2055_v45, %v212_v23  ;;  %v686_v23 = vld [vmem:[%s2554_s5 + $0x160] sm:$0xff]  ;;  %1034 = vmatprep.subr.bf16.mxu1 %v1681_v18 }
  0xb9   :  { %v194_v58 = vmul.f32 %v2057_v46, %v113_v24  ;;  %v1689_v32 = vcombine.high %v682_v22, %v686_v23  ;;  %v1688_v42 = vcombine.low %v682_v22, %v686_v23 }
  0xba   :  { %367 = vperm.xlu1 %1795, %v107_v20   ;;  %1035 = vmatpush1.bf16.msra.mxu1 %v1680_v28 }
  0xbb   :  { %v216_v26 = vpop.permute.xlu1 %215  ;;  %v294_v4 = vadd.f32 %v278_v57, %v194_v58  ;;  %1036 = vmatprep.subr.bf16.mxu1 %v1689_v32  ;;  %v667_v58 = vld [vmem:[%s2554_s5 + $0xc8] sm:$0xff] }
  0xbc   :  { %v118_v27 = vpop.permute.xlu0 %117  ;;  %v279_v5 = vmul.f32 %v2055_v45, %v216_v26 }
  0xbd   :  { %v195_v6 = vmul.f32 %v2057_v46, %v118_v27 }
  0xbe   :  { %1037 = vmatpush1.bf16.msra.mxu1 %v1688_v42 }
  0xbf   :  { %v295_v19 = vadd.f32 %v279_v5, %v195_v6 }
  0xc0   :  { %v123_v29 = vpop.permute.xlu0 %122  ;;  %v128_v30 = vpop.permute.xlu1 %127 }
  0xc1   :  { %v196_v54 = vmul.f32 %v2057_v46, %v123_v29  ;;  %v197_v14 = vmul.f32 %v2057_v46, %v128_v30 }
  0xc5   :  { %v220_v34 = vpop.permute.xlu0 %219  ;;  %v224_v39 = vpop.permute.xlu1 %223 }
  0xc6   :  { %v280_v55 = vmul.f32 %v2055_v45, %v220_v34  ;;  %v281_v10 = vmul.f32 %v2055_v45, %v224_v39  ;;  %v651_v39 = vld [vmem:[%s2554_s5 + $0x48] sm:$0xff] }
  0xc7   :  { %v1659_v53 = vcombine.high %v651_v39, %v655_v40  ;;  %v1658_v38 = vcombine.low %v651_v39, %v655_v40 }
  0xc8   :  { %v296_v2 = vadd.f32 %v280_v55, %v196_v54  ;;  %v297_v24 = vadd.f32 %v281_v10, %v197_v14  ;;  %v659_v55 = vld [vmem:[%s2554_s5 + $0x88] sm:$0xff] }
  0xc9   :  { %v2067_v51 = vpop.permute.xlu0 %231  ;;  %v1667_v41 = vcombine.high %v659_v55, %v663_v56  ;;  %v1666_v61 = vcombine.low %v659_v55, %v663_v56  ;;  %v687_v10 = vld [vmem:[%s2554_s5 + $0x168] sm:$0xff] }
  0xca   :  { %v312_v59 = vpop.permute.xlu1 %311  ;;  %v283_v18 = vmul.f32 %v2055_v45, %v2067_v51 }
  0xcb   :  { %v378_v62 = vmul.f32 %v2069_v52, %v312_v59  ;;  %v671_v59 = vld [vmem:[%s2554_s5 + $0xe8] sm:$0xff] }
  0xcc   :  { %v1675_v0 = vcombine.high %v667_v58, %v671_v59  ;;  %v1674_v6 = vcombine.low %v667_v58, %v671_v59 }
  0xcd   :  { %v2082_v63 = vpop.permute.xlu0 %235  ;;  %v394_v12 = vadd.f32 %v378_v62, %v294_v4 }
  0xce   :  { %v320_v7 = vpop.permute.xlu1 %319 }
  0xcf   :  { %v380_v11 = vmul.f32 %v2069_v52, %v320_v7  ;;  %v417_v27 = vadd.f32 %v2095_v15, %v394_v12 }
  0xd1   :  { %v396_v16 = vadd.f32 %v380_v11, %v296_v2  ;;  %v433_v36 = vmax.f32 %v417_v27, 0.0  ;;  %v675_v2 = vld [vmem:[%s2554_s5 + $0x108] sm:$0xff] }
  0xd2   :  { %v316_v17 = vpop.permute.xlu0 %315  ;;  %v324_v21 = vpop.permute.xlu1 %323  ;;  %v1683_v7 = vcombine.high %v675_v2, %v679_v3  ;;  %v1682_v14 = vcombine.low %v675_v2, %v679_v3 }
  0xd3   :  { %v379_v20 = vmul.f32 %v2069_v52, %v316_v17  ;;  %v381_v25 = vmul.f32 %v2069_v52, %v324_v21  ;;  %v419_v29 = vadd.f32 %v2095_v15, %v396_v16  ;;  %v1691_v17 = vcombine.high %v683_v9, %v687_v10 }
  0xd5   :  { %v395_v26 = vadd.f32 %v379_v20, %v295_v19  ;;  %v397_v30 = vadd.f32 %v381_v25, %v297_v24  ;;  %v435_v43 = vmax.f32 %v419_v29, 0.0  ;;  %v1690_v24 = vcombine.low %v683_v9, %v687_v10 }
  0xd6   :  { %v328_v31 = vpop.permute.xlu0 %327 }
  0xd7   :  { %v418_v33 = vadd.f32 %v2095_v15, %v395_v26  ;;  %v420_v34 = vadd.f32 %v2095_v15, %v397_v30  ;;  %v138_v35 = vpop.permute.xlu1 %137  ;;  %v382_v11 = vmul.f32 %v2069_v52, %v328_v31  ;;  %v284_v26 = vmul.f32 %v2055_v45, %v2082_v63 }
  0xd8   :  { %v199_v19 = vmul.f32 %v2057_v46, %v138_v35 }
  0xd9   :  { %v434_v37 = vmax.f32 %v418_v33, 0.0  ;;  %v436_v44 = vmax.f32 %v420_v34, 0.0 }
  0xda   :  { %v340_v47 = vpop.permute.xlu0 %339  ;;  %v299_v27 = vadd.f32 %v283_v18, %v199_v19 }
  0xdb   :  { %v449_v48 = vpack.c.bf16 %v434_v37, %v433_v36  ;;  %v450_v50 = vpack.c.bf16 %v436_v44, %v435_v43  ;;  %v385_v21 = vmul.f32 %v2069_v52, %v340_v47 }
  0xdc   :  { %v228_v54 = vpop.permute.xlu1 %227 }
  0xdd   :  { %1732 = vmatprep.mubr.msk.bf16.mxu0 %vm496_vm0, %v449_v48  ;;  %v282_v8 = vmul.f32 %v2055_v45, %v228_v54 }
  0xde   :  { %1733 = vmatmul.mubr.msk.bf16.vlgmr.msra.gmra.mrb[0].mxu0 %vm496_vm0, %v450_v50  ;;  %v2125_v57 = vpop.permute.xlu0 %347 }
  0xdf   :  { %1140 = vmatpush1.bf16.msra.mxu0 %v1650_v49  ;;  %v387_v58 = vmul.f32 %v2069_v52, %v2125_v57 }
  0xe0   :  { %1141 = vmatprep.subr.bf16.mxu0 %v1659_v53 }
  0xe1   :  { %v143_v60 = vpop.permute.xlu1 %142 }
  0xe2   :  { %v200_v28 = vmul.f32 %v2057_v46, %v143_v60 }
  0xe3   :  { %1142 = vmatpush1.bf16.msra.mxu0 %v1658_v38  ;;  %v133_v62 = vpop.permute.xlu0 %132 }
  0xe4   :  { %1143 = vmatprep.subr.bf16.mxu0 %v1667_v41  ;;  %v198_v5 = vmul.f32 %v2057_v46, %v133_v62  ;;  %v300_v33 = vadd.f32 %v284_v26, %v200_v28 }
  0xe5   :  { %v148_v4 = vpop.permute.xlu1 %147 }
  0xe6   :  { %v298_v12 = vadd.f32 %v282_v8, %v198_v5  ;;  %v201_v20 = vmul.f32 %v2057_v46, %v148_v4 }
  0xe7   :  { %1144 = vmatpush1.bf16.msra.mxu0 %v1666_v61  ;;  %v158_v49 = vpop.permute.xlu0 %157 }
  0xe8   :  { %1145 = vmatprep.subr.bf16.mxu0 %v1675_v0  ;;  %v398_v22 = vadd.f32 %v382_v11, %v298_v12  ;;  %v203_v41 = vmul.f32 %v2057_v46, %v158_v49 }
  0xea   :  { %v240_v13 = vpop.permute.xlu1 %239  ;;  %v421_v29 = vadd.f32 %v2095_v15, %v398_v22 }
  0xeb   :  { %1146 = vmatpush1.bf16.msra.mxu0 %v1674_v6  ;;  %v285_v16 = vmul.f32 %v2055_v45, %v240_v13  ;;  %v163_v53 = vpop.permute.xlu0 %162 }
  0xec   :  { %1147 = vmatprep.subr.bf16.mxu0 %v1683_v7  ;;  %v437_v36 = vmax.f32 %v421_v29, 0.0  ;;  %v204_v3 = vmul.f32 %v2057_v46, %v163_v53 }
  0xed   :  { %v301_v23 = vadd.f32 %v285_v16, %v201_v20 }
  0xef   :  { %1148 = vmatpush1.bf16.msra.mxu0 %v1682_v14  ;;  %v332_v25 = vpop.permute.xlu1 %331  ;;  %v401_v30 = vadd.f32 %v385_v21, %v301_v23  ;;  %v173_v56 = vpop.permute.xlu0 %172 }
  0xf0   :  { %1149 = vmatprep.subr.bf16.mxu0 %v1691_v17  ;;  %v383_v51 = vmul.f32 %v2069_v52, %v332_v25 }
  0xf1   :  { %v424_v37 = vadd.f32 %v2095_v15, %v401_v30 }
  0xf2   :  { %v399_v31 = vadd.f32 %v383_v51, %v299_v27 }
  0xf3   :  { %1150 = vmatpush1.bf16.msra.mxu0 %v1690_v24  ;;  %v336_v32 = vpop.permute.xlu1 %335  ;;  %v440_v44 = vmax.f32 %v424_v37, 0.0  ;;  %v690_v37 = vld [vmem:[%s2554_s5 + $0x180] sm:$0xff] }
  0xf4   :  { %v422_v34 = vadd.f32 %v2095_v15, %v399_v31  ;;  %v384_v35 = vmul.f32 %v2069_v52, %v336_v32  ;;  %v252_v61 = vpop.permute.xlu0 %251 }
  0xf5   :  { %v288_v4 = vmul.f32 %v2055_v45, %v252_v61 }
  0xf6   :  { %v438_v63 = vmax.f32 %v422_v34, 0.0  ;;  %v400_v39 = vadd.f32 %v384_v35, %v300_v33 }
  0xf7   :  { %v304_v57 = vadd.f32 %v288_v4, %v204_v3 }
  0xf8   :  { %v451_v40 = vpack.c.bf16 %v438_v63, %v437_v36  ;;  %v423_v42 = vadd.f32 %v2095_v15, %v400_v39  ;;  %v153_v43 = vpop.permute.xlu1 %152  ;;  %v264_v29 = vpop.permute.xlu0 %263  ;;  %v206_v36 = vmul.f32 %v2057_v46, %v173_v56  ;;  %v694_v63 = vld [vmem:[%s2554_s5 + $0x1a0] sm:$0xff]  ;;  %v691_v39 = vld [vmem:[%s2554_s5 + $0x188] sm:$0xff] }
  0xf9   :  { %v202_v0 = vmul.f32 %v2057_v46, %v153_v43 }
  0xfa   :  { %v439_v47 = vmax.f32 %v423_v42, 0.0  ;;  %1736 = vmatprep.mubr.msk.bf16.mxu0 %vm496_vm0, %v451_v40 }
  0xfc   :  { %v452_v48 = vpack.c.bf16 %v440_v44, %v439_v47  ;;  %v268_v31 = vpop.permute.xlu0 %267  ;;  %v1697_v44 = vcombine.high %v690_v37, %v694_v63  ;;  %v695_v47 = vld [vmem:[%s2554_s5 + $0x1a8] sm:$0xff] }
  0xfd   :  { %v244_v50 = vpop.permute.xlu1 %243  ;;  %v1699_v53 = vcombine.high %v691_v39, %v695_v47 }
  0xfe   :  { %1737 = vmatmul.mubr.msk.bf16.gmra.mrb[4].mxu0 %vm496_vm0, %v452_v48  ;;  %v286_v62 = vmul.f32 %v2055_v45, %v244_v50  ;;  %v1698_v50 = vcombine.low %v691_v39, %v695_v47  ;;  %1038 = vmatprep.subr.bf16.mxu1 %v1697_v44  ;;  %v656_v44 = vld [vmem:[%s2554_s5 + $0x70] sm:$0xff]  ;;  %v653_v47 = vld [vmem:[%s2554_s5 + $0x58] sm:$0xff] }
  0xff   :  { %1151 = vmatprep.subr.bf16.mxu0 %v1699_v53 }
 0x100   :  { %v302_v6 = vadd.f32 %v286_v62, %v202_v0  ;;  %1152 = vmatpush1.bf16.msra.mxu0 %v1698_v50 }
 0x101   :  { %v248_v54 = vpop.permute.xlu1 %247  ;;  %v360_v35 = vpop.permute.xlu0 %359 }
 0x102   :  { %v287_v38 = vmul.f32 %v2055_v45, %v248_v54  ;;  %v390_v42 = vmul.f32 %v2069_v52, %v360_v35  ;;  %v1696_v54 = vcombine.low %v690_v37, %v694_v63 }
 0x104   :  { %v303_v59 = vadd.f32 %v287_v38, %v203_v41  ;;  %1039 = vmatpush1.bf16.msra.mxu1 %v1696_v54  ;;  %v698_v41 = vld [vmem:[%s2554_s5 + $0x1c0] sm:$0xff] }
 0x105   :  { %v372_v49 = vpop.permute.xlu0 %371 }
 0x106   :  { %v168_v55 = vpop.permute.xlu1 %167  ;;  %v403_v2 = vadd.f32 %v387_v58, %v303_v59  ;;  %v702_v58 = vld [vmem:[%s2554_s5 + $0x1e0] sm:$0xff]  ;;  %v699_v59 = vld [vmem:[%s2554_s5 + $0x1c8] sm:$0xff]  ;;  %v393_v62 = vmul.f32 %v2069_v52, %v372_v49 }
 0x107   :  { %v205_v16 = vmul.f32 %v2057_v46, %v168_v55  ;;  %v291_v55 = vmul.f32 %v2055_v45, %v264_v29  ;;  %v1705_v0 = vcombine.high %v698_v41, %v702_v58  ;;  %v2242_v29 = vld [vmem:[#allocation6] ss:$0 sm:$0xff] }
 0x108   :  { %v426_v8 = vadd.f32 %v2095_v15, %v403_v2  ;;  %v703_v2 = vld [vmem:[%s2554_s5 + $0x1e8] sm:$0xff] }
 0x109   :  { %v1706_v4 = vcombine.low %v699_v59, %v703_v2  ;;  %1040 = vmatprep.subr.bf16.mxu1 %v1705_v0 }
 0x10a   :  { %v442_v14 = vmax.f32 %v426_v8, 0.0  ;;  %v292_v8 = vmul.f32 %v2055_v45, %v268_v31 }
 0x10b   :  { %v256_v60 = vpop.permute.xlu1 %255 }
 0x10c   :  { %v289_v11 = vmul.f32 %v2055_v45, %v256_v60 }
 0x10e   :  { %v305_v20 = vadd.f32 %v289_v11, %v205_v16 }
 0x110   :  { %v344_v5 = vpop.permute.xlu1 %343 }
 0x111   :  { %v386_v7 = vmul.f32 %v2069_v52, %v344_v5  ;;  %v1707_v5 = vcombine.high %v699_v59, %v703_v2  ;;  %v672_v2 = vld [vmem:[%s2554_s5 + $0xf0] sm:$0xff] }
 0x113   :  { %v402_v9 = vadd.f32 %v386_v7, %v302_v6  ;;  %v1704_v6 = vcombine.low %v698_v41, %v702_v58  ;;  %1153 = vmatprep.subr.bf16.mxu0 %v1707_v5  ;;  %v661_v41 = vld [vmem:[%s2554_s5 + $0x98] sm:$0xff] }
 0x114   :  { %v352_v10 = vpop.permute.xlu1 %351  ;;  %1154 = vmatpush1.bf16.msra.mxu0 %v1706_v4  ;;  %v665_v58 = vld [vmem:[%s2554_s5 + $0xb8] sm:$0xff] }
 0x115   :  { %v425_v12 = vadd.f32 %v2095_v15, %v402_v9  ;;  %v388_v13 = vmul.f32 %v2069_v52, %v352_v10  ;;  %1041 = vmatpush1.bf16.msra.mxu1 %v1704_v6  ;;  %v2291_v0 = vcombine.high %v661_v41, %v665_v58  ;;  %v673_v4 = vld [vmem:[%s2554_s5 + $0xf8] sm:$0xff]  ;;  %v2303_v6 = vcombine.low %v661_v41, %v665_v58 }
 0x117   :  { %v441_v17 = vmax.f32 %v425_v12, 0.0  ;;  %v404_v18 = vadd.f32 %v388_v13, %v304_v57 }
 0x118   :  { %v356_v19 = vpop.permute.xlu1 %355 }
 0x119   :  { %v453_v21 = vpack.c.bf16 %v442_v14, %v441_v17  ;;  %v389_v22 = vmul.f32 %v2069_v52, %v356_v19  ;;  %v427_v23 = vadd.f32 %v2095_v15, %v404_v18 }
 0x11b   :  { %v405_v24 = vadd.f32 %v389_v22, %v305_v20  ;;  %1740 = vmatprep.mubr.msk.bf16.mxu0 %vm496_vm0, %v453_v21  ;;  %v443_v27 = vmax.f32 %v427_v23, 0.0 }
 0x11d   :  { %v428_v25 = vadd.f32 %v2095_v15, %v405_v24  ;;  %v178_v26 = vpop.permute.xlu1 %177 }
 0x11e   :  { %v207_v56 = vmul.f32 %v2057_v46, %v178_v26 }
 0x11f   :  { %v444_v28 = vmax.f32 %v428_v25, 0.0  ;;  %v648_v25 = vld [vmem:[%s2554_s5 + $0x30] sm:$0xff] }
 0x120   :  { %v307_v7 = vadd.f32 %v291_v55, %v207_v56  ;;  %v660_v55 = vld [vmem:[%s2554_s5 + $0x90] sm:$0xff] }
 0x121   :  { %v454_v51 = vpack.c.bf16 %v444_v28, %v443_v27  ;;  %v649_v28 = vld [vmem:[%s2554_s5 + $0x38] sm:$0xff] }
 0x122   :  { %v260_v30 = vpop.permute.xlu1 %259 }
 0x123   :  { %1741 = vmatmul.mubr.msk.bf16.gmra.mrb[8].mxu0 %vm496_vm0, %v454_v51  ;;  %v290_v34 = vmul.f32 %v2055_v45, %v260_v30 }
 0x125   :  { %v306_v40 = vadd.f32 %v290_v34, %v206_v36 }
 0x127   :  { %v183_v32 = vpop.permute.xlu1 %182  ;;  %v406_v60 = vadd.f32 %v390_v42, %v306_v40  ;;  %v652_v40 = vld [vmem:[%s2554_s5 + $0x50] sm:$0xff] }
 0x128   :  { %v208_v9 = vmul.f32 %v2057_v46, %v183_v32  ;;  %v1661_v54 = vcombine.high %v652_v40, %v656_v44  ;;  %v1660_v59 = vcombine.low %v652_v40, %v656_v44 }
 0x129   :  { %v429_v10 = vadd.f32 %v2095_v15, %v406_v60 }
 0x12a   :  { %v308_v14 = vadd.f32 %v292_v8, %v208_v9  ;;  %v676_v8 = vld [vmem:[%s2554_s5 + $0x110] sm:$0xff] }
 0x12b   :  { %v188_v33 = vpop.permute.xlu1 %187  ;;  %v445_v18 = vmax.f32 %v429_v10, 0.0  ;;  %v677_v10 = vld [vmem:[%s2554_s5 + $0x118] sm:$0xff] }
 0x12c   :  { %v209_v38 = vmul.f32 %v2057_v46, %v188_v33 }
 0x130   :  { %v272_v43 = vpop.permute.xlu1 %271 }
 0x131   :  { %v293_v48 = vmul.f32 %v2055_v45, %v272_v43 }
 0x133   :  { %v309_v61 = vadd.f32 %v293_v48, %v209_v38  ;;  %v657_v48 = vld [vmem:[%s2554_s5 + $0x78] sm:$0xff]  ;;  %v664_v38 = vld [vmem:[%s2554_s5 + $0xb0] sm:$0xff] }
 0x134   :  { %v2269_v56 = vcombine.high %v653_v47, %v657_v48  ;;  %v2285_v60 = vcombine.low %v653_v47, %v657_v48  ;;  %v1668_v5 = vcombine.low %v660_v55, %v664_v38 }
 0x135   :  { %v364_v3 = vpop.permute.xlu1 %363  ;;  %v409_v11 = vadd.f32 %v393_v62, %v309_v61  ;;  %v1669_v61 = vcombine.high %v660_v55, %v664_v38  ;;  %v668_v62 = vld [vmem:[%s2554_s5 + $0xd0] sm:$0xff] }
 0x136   :  { %v391_v57 = vmul.f32 %v2069_v52, %v364_v3  ;;  %v669_v3 = vld [vmem:[%s2554_s5 + $0xd8] sm:$0xff] }
 0x137   :  { %v432_v45 = vadd.f32 %v2095_v15, %v409_v11  ;;  %v2309_v9 = vcombine.high %v669_v3, %v673_v4  ;;  %v681_v11 = vld [vmem:[%s2554_s5 + $0x138] sm:$0xff] }
 0x138   :  { %v407_v12 = vadd.f32 %v391_v57, %v307_v7  ;;  %v1677_v7 = vcombine.high %v668_v62, %v672_v2  ;;  %v680_v57 = vld [vmem:[%s2554_s5 + $0x130] sm:$0xff] }
 0x139   :  { %v368_v13 = vpop.permute.xlu1 %367  ;;  %v448_v22 = vmax.f32 %v432_v45, 0.0  ;;  %v685_v45 = vld [vmem:[%s2554_s5 + $0x158] sm:$0xff] }
 0x13a   :  { %v430_v16 = vadd.f32 %v2095_v15, %v407_v12  ;;  %v392_v17 = vmul.f32 %v2069_v52, %v368_v13  ;;  %v644_v52 = vld [vmem:[%s2554_s5 + $0x10] sm:$0xff]  ;;  %v1676_v12 = vcombine.low %v668_v62, %v672_v2  ;;  %v2325_v13 = vcombine.low %v669_v3, %v673_v4 }
 0x13b   :  { %v1652_v26 = vcombine.low %v644_v52, %v648_v25  ;;  %v1653_v27 = vcombine.high %v644_v52, %v648_v25  ;;  %v693_v52 = vld [vmem:[%s2554_s5 + $0x198] sm:$0xff] }
 0x13c   :  { %v446_v46 = vmax.f32 %v430_v16, 0.0  ;;  %v408_v19 = vadd.f32 %v392_v17, %v308_v14  ;;  %v1685_v14 = vcombine.high %v676_v8, %v680_v57  ;;  %v684_v16 = vld [vmem:[%s2554_s5 + $0x150] sm:$0xff]  ;;  %v2331_v17 = vcombine.high %v677_v10, %v681_v11  ;;  %v697_v25 = vld [vmem:[%s2554_s5 + $0x1b8] sm:$0xff] }
 0x13d   :  { %1252 = vmatprep.subr.bf16.mxu1 %v1653_v27 }
 0x13e   :  { %v455_v20 = vpack.c.bf16 %v446_v46, %v445_v18  ;;  %v431_v21 = vadd.f32 %v2095_v15, %v408_v19  ;;  %v645_v15 = vld [vmem:[%s2554_s5 + $0x18] sm:$0xff]  ;;  %v688_v18 = vld [vmem:[%s2554_s5 + $0x170] sm:$0xff]  ;;  %v1684_v19 = vcombine.low %v676_v8, %v680_v57 }
 0x13f   :  { %v2239_v51 = vcombine.high %v645_v15, %v649_v28  ;;  %v2264_v53 = vcombine.low %v645_v15, %v649_v28  ;;  %v689_v46 = vld [vmem:[%s2554_s5 + $0x178] sm:$0xff]  ;;  %v700_v28 = vld [vmem:[%s2554_s5 + $0x1d0] sm:$0xff] }
 0x140   :  { %v447_v23 = vmax.f32 %v431_v21, 0.0  ;;  %1744 = vmatprep.mubr.msk.bf16.mxu0 %vm496_vm0, %v455_v20  ;;  %v2343_v20 = vcombine.low %v677_v10, %v681_v11  ;;  %v1693_v21 = vcombine.high %v684_v16, %v688_v18  ;;  %v2361_v27 = vcombine.low %v685_v45, %v689_v46 }
 0x141   :  { %1365 = vmatprep.subr.bf16.mxu0 %v2239_v51 }
 0x142   :  { %v456_v24 = vpack.c.bf16 %v448_v22, %v447_v23  ;;  %v692_v22 = vld [vmem:[%s2554_s5 + $0x190] sm:$0xff]  ;;  %v2349_v23 = vcombine.high %v685_v45, %v689_v46 }
 0x144   :  { %1745 = vmatmul.mubr.msk.bf16.gmra.mrb[12].mxu0 %vm496_vm0, %v456_v24  ;;  %v696_v24 = vld [vmem:[%s2554_s5 + $0x1b0] sm:$0xff] }
 0x145   :  { %1171 = vmatprep.mubr.bf16.mxu0 %v1874_v1  ;;  %v1701_v15 = vcombine.high %v692_v22, %v696_v24 }
 0x1b1   :  { %v1734_v30 = vpop.f32.mrb[0].mxu0 }
 0x1b2   :  { %v564_v31 = vadd.f32 %v1734_v30, %v2242_v29  ;;  %v555_v32 = vpop.f32.mrb[1].mxu0  ;;  %v2367_v30 = vcombine.high %v693_v52, %v697_v25 }
 0x1b3   :  { %v556_v33 = vadd.f32 %v2242_v29, %v555_v32  ;;  %v1735_v34 = vpop.f32.mrb[2].mxu0  ;;  %v701_v32 = vld [vmem:[%s2554_s5 + $0x1d8] sm:$0xff] }
 0x1b4   :  { %v567_v35 = vadd.f32 %v1735_v34, %v2242_v29  ;;  %v558_v36 = vpop.f32.mrb[3].mxu0  ;;  %v620_v63 = vmax.f32 %v564_v31, 0.0  ;;  %v704_v31 = vld [vmem:[%s2554_s5 + $0x1f0] sm:$0xff]  ;;  %v1700_v34 = vcombine.low %v692_v22, %v696_v24 }
 0x1b5   :  { %v559_v37 = vadd.f32 %v2242_v29, %v558_v36  ;;  %v618_v42 = vmax.f32 %v556_v33, 0.0  ;;  %v705_v33 = vld [vmem:[%s2554_s5 + $0x1f8] sm:$0xff]  ;;  %v1708_v48 = vcombine.low %v700_v28, %v704_v31 }
 0x1b6   :  { %v621_v39 = vmax.f32 %v567_v35, 0.0  ;;  %v2379_v35 = vcombine.low %v693_v52, %v697_v25 }
 0x1b7   :  { %v619_v43 = vmax.f32 %v559_v37, 0.0  ;;  %v1709_v37 = vcombine.high %v700_v28, %v704_v31 }
 0x1b8   :  { %v2260_v49 = vpack.c.bf16 %v621_v39, %v620_v63  ;;  %v2382_v63 = vcombine.high %v701_v32, %v705_v33 }
 0x1b9   :  { %v2262_v50 = vpack.c.bf16 %v619_v43, %v618_v42 }
 0x1bb   :  { %1059 = vmatmul.mubr.bf16.vlgmr.msra.gmra.mrb[0].mxu1 %v2262_v50  ;;  %1172 = vmatmul.mubr.bf16.vlgmr.msra.gmra.mrb[16].mxu0 %v2262_v50 }
 0x1bc   :  { %1068 = vmatprep.mubr.bf16.mxu1 %v1874_v1  ;;  %1181 = vmatprep.mubr.bf16.mxu0 %v1874_v1 }
 0x1bd   :  { %1253 = vmatpush1.bf16.msra.mxu1 %v1652_v26  ;;  %1366 = vmatpush1.bf16.msra.mxu0 %v2264_v53  ;;  %v1692_v26 = vcombine.low %v684_v16, %v688_v18 }
 0x1be   :  { %1254 = vmatprep.subr.bf16.mxu1 %v1661_v54  ;;  %1367 = vmatprep.subr.bf16.mxu0 %v2269_v56  ;;  %v2388_v54 = vcombine.low %v701_v32, %v705_v33 }
 0x1c1   :  { %1255 = vmatpush1.bf16.msra.mxu1 %v1660_v59  ;;  %1368 = vmatpush1.bf16.msra.mxu0 %v2285_v60 }
 0x1c2   :  { %1256 = vmatprep.subr.bf16.mxu1 %v1669_v61  ;;  %1369 = vmatprep.subr.bf16.mxu0 %v2291_v0 }
 0x1c3   :  { %1069 = vmatmul.mubr.bf16.gmra.mrb[4].mxu1 %v2260_v49  ;;  %1182 = vmatmul.mubr.bf16.gmra.mrb[20].mxu0 %v2260_v49 }
 0x1c4   :  { %1078 = vmatprep.mubr.bf16.mxu1 %v1874_v1  ;;  %1191 = vmatprep.mubr.bf16.mxu0 %v1874_v1 }
 0x1c5   :  { %1257 = vmatpush1.bf16.msra.mxu1 %v1668_v5  ;;  %1370 = vmatpush1.bf16.msra.mxu0 %v2303_v6 }
 0x1c6   :  { %1258 = vmatprep.subr.bf16.mxu1 %v1677_v7  ;;  %1371 = vmatprep.subr.bf16.mxu0 %v2309_v9 }
 0x1c9   :  { %1259 = vmatpush1.bf16.msra.mxu1 %v1676_v12  ;;  %1372 = vmatpush1.bf16.msra.mxu0 %v2325_v13 }
 0x1ca   :  { %1260 = vmatprep.subr.bf16.mxu1 %v1685_v14  ;;  %1373 = vmatprep.subr.bf16.mxu0 %v2331_v17 }
 0x1cd   :  { %1261 = vmatpush1.bf16.msra.mxu1 %v1684_v19  ;;  %1374 = vmatpush1.bf16.msra.mxu0 %v2343_v20 }
 0x1ce   :  { %1262 = vmatprep.subr.bf16.mxu1 %v1693_v21  ;;  %1375 = vmatprep.subr.bf16.mxu0 %v2349_v23 }
 0x1d1   :  { %1263 = vmatpush1.bf16.msra.mxu1 %v1692_v26  ;;  %1376 = vmatpush1.bf16.msra.mxu0 %v2361_v27  ;;  %v1738_v36 = vpop.f32.mrb[4].mxu0 }
 0x1d2   :  { %1264 = vmatprep.subr.bf16.mxu1 %v1701_v15  ;;  %1377 = vmatprep.subr.bf16.mxu0 %v2367_v30  ;;  %v580_v39 = vadd.f32 %v1738_v36, %v2242_v29  ;;  %v571_v40 = vpop.f32.mrb[5].mxu0 }
 0x1d3   :  { %v572_v42 = vadd.f32 %v2242_v29, %v571_v40  ;;  %v1739_v43 = vpop.f32.mrb[6].mxu0 }
 0x1d4   :  { %v583_v44 = vadd.f32 %v1739_v43, %v2242_v29  ;;  %v574_v47 = vpop.f32.mrb[7].mxu0  ;;  %v624_v38 = vmax.f32 %v580_v39, 0.0 }
 0x1d5   :  { %1265 = vmatpush1.bf16.msra.mxu1 %v1700_v34  ;;  %1378 = vmatpush1.bf16.msra.mxu0 %v2379_v35  ;;  %v575_v55 = vadd.f32 %v2242_v29, %v574_v47  ;;  %v622_v58 = vmax.f32 %v572_v42, 0.0 }
 0x1d6   :  { %1266 = vmatprep.subr.bf16.mxu1 %v1709_v37  ;;  %1379 = vmatprep.subr.bf16.mxu0 %v2382_v63  ;;  %v625_v41 = vmax.f32 %v583_v44, 0.0 }
 0x1d7   :  { %v623_v59 = vmax.f32 %v575_v55, 0.0 }
 0x1d8   :  { %v2392_v61 = vpack.c.bf16 %v625_v41, %v624_v38 }
 0x1d9   :  { %1267 = vmatpush1.bf16.msra.mxu1 %v1708_v48  ;;  %1380 = vmatpush1.bf16.msra.mxu0 %v2388_v54  ;;  %v2395_v62 = vpack.c.bf16 %v623_v59, %v622_v58 }
 0x1da   :  { %1748 = vmatprep.subr.bf16.mxu1 %v2239_v51 }
 0x1db   :  { %1079 = vmatmul.mubr.bf16.gmra.mrb[8].mxu1 %v2395_v62  ;;  %1192 = vmatmul.mubr.bf16.gmra.mrb[24].mxu0 %v2395_v62 }
 0x1dc   :  { %1088 = vmatprep.mubr.bf16.mxu1 %v1874_v1  ;;  %1201 = vmatprep.mubr.bf16.mxu0 %v1874_v1 }
 0x1e3   :  { %1089 = vmatmul.mubr.bf16.gmra.mrb[12].mxu1 %v2392_v61  ;;  %1202 = vmatmul.mubr.bf16.gmra.mrb[28].mxu0 %v2392_v61 }
 0x1e4   :  { %1098 = vmatprep.mubr.bf16.mxu1 %v1874_v1  ;;  %1211 = vmatprep.mubr.bf16.mxu0 %v1874_v1 }
 0x1f6   :  { %v1742_v2 = vpop.f32.mrb[8].mxu0 }
 0x1f7   :  { %v596_v3 = vadd.f32 %v1742_v2, %v2242_v29  ;;  %v587_v51 = vpop.f32.mrb[9].mxu0 }
 0x1f8   :  { %v588_v4 = vadd.f32 %v2242_v29, %v587_v51  ;;  %v1743_v5 = vpop.f32.mrb[10].mxu0 }
 0x1f9   :  { %v599_v7 = vadd.f32 %v1743_v5, %v2242_v29  ;;  %v590_v8 = vpop.f32.mrb[11].mxu0  ;;  %v628_v10 = vmax.f32 %v596_v3, 0.0 }
 0x1fa   :  { %v591_v57 = vadd.f32 %v2242_v29, %v590_v8  ;;  %v626_v12 = vmax.f32 %v588_v4, 0.0 }
 0x1fb   :  { %v629_v11 = vmax.f32 %v599_v7, 0.0 }
 0x1fc   :  { %v627_v14 = vmax.f32 %v591_v57, 0.0 }
 0x1fd   :  { %v2410_v16 = vpack.c.bf16 %v629_v11, %v628_v10 }
 0x1fe   :  { %v638_v18 = vpack.c.bf16 %v627_v14, %v626_v12 }
 0x200   :  { %1099 = vmatmul.mubr.bf16.gmra.mrb[16].mxu1 %v638_v18  ;;  %1212 = vmatmul.mubr.bf16.gmra.mrb[32].mxu0 %v638_v18 }
 0x201   :  { %1108 = vmatprep.mubr.bf16.mxu1 %v1874_v1  ;;  %1221 = vmatprep.mubr.bf16.mxu0 %v1874_v1 }
 0x208   :  { %1109 = vmatmul.mubr.bf16.gmra.mrb[20].mxu1 %v2410_v16  ;;  %1222 = vmatmul.mubr.bf16.gmra.mrb[36].mxu0 %v2410_v16 }
 0x209   :  { %1118 = vmatprep.mubr.bf16.mxu1 %v1874_v1  ;;  %1231 = vmatprep.mubr.bf16.mxu0 %v1874_v1 }
 0x217   :  { %v1746_v45 = vpop.f32.mrb[12].mxu0 }
 0x218   :  { %v612_v46 = vadd.f32 %v1746_v45, %v2242_v29  ;;  %v603_v19 = vpop.f32.mrb[13].mxu0 }
 0x219   :  { %v604_v21 = vadd.f32 %v2242_v29, %v603_v19  ;;  %v1747_v22 = vpop.f32.mrb[14].mxu0 }
 0x21a   :  { %v615_v24 = vadd.f32 %v1747_v22, %v2242_v29  ;;  %v606_v52 = vpop.f32.mrb[15].mxu0  ;;  %v632_v26 = vmax.f32 %v612_v46, 0.0 }
 0x21b   :  { %v607_v25 = vadd.f32 %v2242_v29, %v606_v52  ;;  %v630_v28 = vmax.f32 %v604_v21, 0.0 }
 0x21c   :  { %v633_v15 = vmax.f32 %v615_v24, 0.0 }
 0x21d   :  { %v631_v31 = vmax.f32 %v607_v25, 0.0 }
 0x21e   :  { %v641_v32 = vpack.c.bf16 %v633_v15, %v632_v26 }
 0x21f   :  { %v640_v33 = vpack.c.bf16 %v631_v31, %v630_v28 }
 0x221   :  { %1119 = vmatmul.mubr.bf16.gmra.mrb[24].mxu1 %v640_v33  ;;  %1232 = vmatmul.mubr.bf16.gmra.mrb[40].mxu0 %v640_v33 }
 0x222   :  { %1128 = vmatprep.mubr.bf16.mxu1 %v1874_v1  ;;  %1241 = vmatprep.mubr.bf16.mxu0 %v1874_v1 }
 0x229   :  { %1129 = vmatmul.mubr.bf16.gmra.mrb[28].mxu1 %v641_v32  ;;  %1242 = vmatmul.mubr.bf16.gmra.mrb[44].mxu0 %v641_v32 }
 0x22a   :  { %1284 = vmatprep.mubr.bf16.mxu1 %v1874_v1  ;;  %1397 = vmatprep.mubr.bf16.mxu0 %v1874_v1 }
 0x231   :  { %1285 = vmatmul.mubr.bf16.vlgmr.msra.gmra.mrb[32].mxu1 %v2262_v50  ;;  %1398 = vmatmul.mubr.bf16.vlgmr.msra.gmra.mrb[48].mxu0 %v2262_v50 }
 0x232   :  { %1756 = vmatpush1.bf16.msra.mxu1 %v2264_v53  ;;  %1294 = vmatprep.mubr.bf16.mxu1 %v1874_v1 }
 0x233   :  { %1749 = vmatprep.subr.bf16.mxu1 %v2269_v56  ;;  %1407 = vmatprep.mubr.bf16.mxu0 %v1874_v1 }
 0x236   :  { %1757 = vmatpush1.bf16.msra.mxu1 %v2285_v60 }
 0x237   :  { %1750 = vmatprep.subr.bf16.mxu1 %v2291_v0 }
 0x239   :  { %1295 = vmatmul.mubr.bf16.gmra.mrb[36].mxu1 %v2260_v49  ;;  %1408 = vmatmul.mubr.bf16.gmra.mrb[52].mxu0 %v2260_v49 }
 0x23a   :  { %1304 = vmatprep.mubr.bf16.mxu1 %v1874_v1  ;;  %1417 = vmatprep.mubr.bf16.mxu0 %v1874_v1 }
 0x23b   :  { %1758 = vmatpush1.bf16.msra.mxu1 %v2303_v6 }
 0x23c   :  { %1751 = vmatprep.subr.bf16.mxu1 %v2309_v9 }
 0x23f   :  { %1759 = vmatpush1.bf16.msra.mxu1 %v2325_v13 }
 0x240   :  { %1752 = vmatprep.subr.bf16.mxu1 %v2331_v17 }
 0x241   :  { %1305 = vmatmul.mubr.bf16.gmra.mrb[40].mxu1 %v2395_v62  ;;  %1418 = vmatmul.mubr.bf16.gmra.mrb[56].mxu0 %v2395_v62 }
 0x242   :  { %1314 = vmatprep.mubr.bf16.mxu1 %v1874_v1  ;;  %1427 = vmatprep.mubr.bf16.mxu0 %v1874_v1 }
 0x243   :  { %1760 = vmatpush1.bf16.msra.mxu1 %v2343_v20 }
 0x244   :  { %1753 = vmatprep.subr.bf16.mxu1 %v2349_v23 }
 0x247   :  { %1761 = vmatpush1.bf16.msra.mxu1 %v2361_v27 }
 0x248   :  { %1754 = vmatprep.subr.bf16.mxu1 %v2367_v30 }
 0x249   :  { %1315 = vmatmul.mubr.bf16.gmra.mrb[44].mxu1 %v2392_v61  ;;  %1428 = vmatmul.mubr.bf16.gmra.mrb[60].mxu0 %v2392_v61 }
 0x24a   :  { %1324 = vmatprep.mubr.bf16.mxu1 %v1874_v1  ;;  %1437 = vmatprep.mubr.bf16.mxu0 %v1874_v1 }
 0x24b   :  { %1762 = vmatpush1.bf16.msra.mxu1 %v2379_v35 }
 0x24c   :  { %1755 = vmatprep.subr.bf16.mxu1 %v2382_v63 }
 0x24f   :  { %1763 = vmatpush1.bf16.msra.mxu1 %v2388_v54 }
 0x251   :  { %1325 = vmatmul.mubr.bf16.gmra.mrb[48].mxu1 %v638_v18  ;;  %1438 = vmatmul.mubr.bf16.gmra.mrb[64].mxu0 %v638_v18 }
 0x252   :  { %1334 = vmatprep.mubr.bf16.mxu1 %v1874_v1  ;;  %1447 = vmatprep.mubr.bf16.mxu0 %v1874_v1 }
 0x259   :  { %1335 = vmatmul.mubr.bf16.gmra.mrb[52].mxu1 %v2410_v16  ;;  %1448 = vmatmul.mubr.bf16.gmra.mrb[68].mxu0 %v2410_v16 }
 0x25a   :  { %1344 = vmatprep.mubr.bf16.mxu1 %v1874_v1  ;;  %1457 = vmatprep.mubr.bf16.mxu0 %v1874_v1 }
 0x261   :  { %1345 = vmatmul.mubr.bf16.gmra.mrb[56].mxu1 %v640_v33  ;;  %1458 = vmatmul.mubr.bf16.gmra.mrb[72].mxu0 %v640_v33 }
 0x262   :  { %1354 = vmatprep.mubr.bf16.mxu1 %v1874_v1 }
 0x269   :  { %1355 = vmatmul.mubr.bf16.gmra.mrb[60].mxu1 %v641_v32 }
 0x26a   :  { %1467 = vmatprep.mubr.bf16.mxu1 %v1874_v1 }
 0x271   :  { %1468 = vmatmul.mubr.bf16.vlgmr.msra.gmra.mrb[64].mxu1 %v641_v32 }
 0x28e   :  { %v1060_v29 = vpop.f32.mrb[0].mxu1  ;;  %v1173_v49 = vpop.f32.mrb[16].mxu0 }
 0x28f   :  { %v1062_v50 = vpop.f32.mrb[1].mxu1  ;;  %v1175_v53 = vpop.f32.mrb[17].mxu0 }
 0x290   :  { %v1064_v56 = vpop.f32.mrb[2].mxu1  ;;  %v1177_v60 = vpop.f32.mrb[18].mxu0 }
 0x291   :  { %v1478_v0 = vmax.f32 %v1060_v29, %v1064_v56  ;;  %v1480_v6 = vmax.f32 %v1173_v49, %v1177_v60  ;;  %v1066_v9 = vpop.f32.mrb[3].mxu1  ;;  %v1179_v13 = vpop.f32.mrb[19].mxu0 }
 0x292   :  { %v1479_v17 = vmax.f32 %v1062_v50, %v1066_v9  ;;  %v1481_v20 = vmax.f32 %v1175_v53, %v1179_v13 }
 0x296   :  { %v1070_v23 = vpop.f32.mrb[4].mxu1  ;;  %v1183_v27 = vpop.f32.mrb[20].mxu0 }
 0x297   :  { %v1072_v30 = vpop.f32.mrb[5].mxu1  ;;  %v1185_v34 = vpop.f32.mrb[21].mxu0 }
 0x298   :  { %v1074_v35 = vpop.f32.mrb[6].mxu1  ;;  %v1187_v36 = vpop.f32.mrb[22].mxu0 }
 0x299   :  { %v1486_v1 = vmax.f32 %v1070_v23, %v1074_v35  ;;  %v1488_v37 = vmax.f32 %v1183_v27, %v1187_v36  ;;  %v1076_v63 = vpop.f32.mrb[7].mxu1  ;;  %v1189_v39 = vpop.f32.mrb[23].mxu0 }
 0x29a   :  { %v1487_v40 = vmax.f32 %v1072_v30, %v1076_v63  ;;  %v1489_v42 = vmax.f32 %v1185_v34, %v1189_v39 }
 0x29b   :  { %v2465_v43 = vmax.f32 %v1478_v0, %v1486_v1  ;;  %v2467_v44 = vmax.f32 %v1480_v6, %v1488_v37 }
 0x29c   :  { %v2469_v47 = vmax.f32 %v1479_v17, %v1487_v40  ;;  %v2471_v48 = vmax.f32 %v1481_v20, %v1489_v42 }
 0x2ae   :  { %v1080_v54 = vpop.f32.mrb[8].mxu1  ;;  %v1193_v55 = vpop.f32.mrb[24].mxu0 }
 0x2af   :  { %v1082_v38 = vpop.f32.mrb[9].mxu1  ;;  %v1195_v41 = vpop.f32.mrb[25].mxu0 }
 0x2b0   :  { %v1084_v58 = vpop.f32.mrb[10].mxu1  ;;  %v1197_v59 = vpop.f32.mrb[26].mxu0 }
 0x2b1   :  { %v1494_v61 = vmax.f32 %v1080_v54, %v1084_v58  ;;  %v1496_v62 = vmax.f32 %v1193_v55, %v1197_v59  ;;  %v1086_v2 = vpop.f32.mrb[11].mxu1  ;;  %v1199_v3 = vpop.f32.mrb[27].mxu0 }
 0x2b2   :  { %v1495_v51 = vmax.f32 %v1082_v38, %v1086_v2  ;;  %v1497_v4 = vmax.f32 %v1195_v41, %v1199_v3 }
 0x2b6   :  { %v1090_v5 = vpop.f32.mrb[12].mxu1  ;;  %v1203_v7 = vpop.f32.mrb[28].mxu0 }
 0x2b7   :  { %v1092_v8 = vpop.f32.mrb[13].mxu1  ;;  %v1205_v57 = vpop.f32.mrb[29].mxu0 }
 0x2b8   :  { %v1094_v10 = vpop.f32.mrb[14].mxu1  ;;  %v1207_v11 = vpop.f32.mrb[30].mxu0 }
 0x2b9   :  { %v1502_v12 = vmax.f32 %v1090_v5, %v1094_v10  ;;  %v1504_v14 = vmax.f32 %v1203_v7, %v1207_v11  ;;  %v1096_v16 = vpop.f32.mrb[15].mxu1  ;;  %v1209_v18 = vpop.f32.mrb[31].mxu0 }
 0x2ba   :  { %v1503_v45 = vmax.f32 %v1092_v8, %v1096_v16  ;;  %v1505_v46 = vmax.f32 %v1205_v57, %v1209_v18 }
 0x2bb   :  { %v2473_v19 = vmax.f32 %v1494_v61, %v1502_v12  ;;  %v2475_v21 = vmax.f32 %v1496_v62, %v1504_v14 }
 0x2bc   :  { %v2477_v22 = vmax.f32 %v1495_v51, %v1503_v45  ;;  %v2479_v24 = vmax.f32 %v1497_v4, %v1505_v46 }
 0x2bd   :  { %v1574_v52 = vmax.f32 %v2465_v43, %v2473_v19  ;;  %v1576_v25 = vmax.f32 %v2467_v44, %v2475_v21 }
 0x2be   :  { %v1575_v26 = vmax.f32 %v2469_v47, %v2477_v22  ;;  %v1577_v15 = vmax.f32 %v2471_v48, %v2479_v24 }
 0x2d3   :  { %v1100_v28 = vpop.f32.mrb[16].mxu1  ;;  %v1213_v31 = vpop.f32.mrb[32].mxu0 }
 0x2d4   :  { %v1102_v32 = vpop.f32.mrb[17].mxu1  ;;  %v1215_v33 = vpop.f32.mrb[33].mxu0 }
 0x2d5   :  { %v1104_v29 = vpop.f32.mrb[18].mxu1  ;;  %v1217_v49 = vpop.f32.mrb[34].mxu0 }
 0x2d6   :  { %v1510_v50 = vmax.f32 %v1100_v28, %v1104_v29  ;;  %v1512_v53 = vmax.f32 %v1213_v31, %v1217_v49  ;;  %v1106_v56 = vpop.f32.mrb[19].mxu1  ;;  %v1219_v60 = vpop.f32.mrb[35].mxu0 }
 0x2d7   :  { %v1511_v0 = vmax.f32 %v1102_v32, %v1106_v56  ;;  %v1513_v6 = vmax.f32 %v1215_v33, %v1219_v60 }
 0x2db   :  { %v1110_v9 = vpop.f32.mrb[20].mxu1  ;;  %v1223_v13 = vpop.f32.mrb[36].mxu0 }
 0x2dc   :  { %v1112_v17 = vpop.f32.mrb[21].mxu1  ;;  %v1225_v20 = vpop.f32.mrb[37].mxu0 }
 0x2dd   :  { %v1114_v23 = vpop.f32.mrb[22].mxu1  ;;  %v1227_v27 = vpop.f32.mrb[38].mxu0 }
 0x2de   :  { %v1518_v30 = vmax.f32 %v1110_v9, %v1114_v23  ;;  %v1520_v34 = vmax.f32 %v1223_v13, %v1227_v27  ;;  %v1116_v35 = vpop.f32.mrb[23].mxu1  ;;  %v1229_v36 = vpop.f32.mrb[39].mxu0 }
 0x2df   :  { %v1519_v1 = vmax.f32 %v1112_v17, %v1116_v35  ;;  %v1521_v37 = vmax.f32 %v1225_v20, %v1229_v36 }
 0x2e0   :  { %v1558_v63 = vmax.f32 %v1510_v50, %v1518_v30  ;;  %v1560_v39 = vmax.f32 %v1512_v53, %v1520_v34 }
 0x2e1   :  { %v1559_v40 = vmax.f32 %v1511_v0, %v1519_v1  ;;  %v1561_v42 = vmax.f32 %v1513_v6, %v1521_v37 }
 0x2f4   :  { %v1120_v54 = vpop.f32.mrb[24].mxu1  ;;  %v1233_v55 = vpop.f32.mrb[40].mxu0 }
 0x2f5   :  { %v1122_v38 = vpop.f32.mrb[25].mxu1  ;;  %v1235_v41 = vpop.f32.mrb[41].mxu0 }
 0x2f6   :  { %v1124_v58 = vpop.f32.mrb[26].mxu1  ;;  %v1237_v59 = vpop.f32.mrb[42].mxu0 }
 0x2f7   :  { %v1526_v61 = vmax.f32 %v1120_v54, %v1124_v58  ;;  %v1528_v62 = vmax.f32 %v1233_v55, %v1237_v59  ;;  %v1126_v2 = vpop.f32.mrb[27].mxu1  ;;  %v1239_v3 = vpop.f32.mrb[43].mxu0 }
 0x2f8   :  { %v1527_v51 = vmax.f32 %v1122_v38, %v1126_v2  ;;  %v1529_v4 = vmax.f32 %v1235_v41, %v1239_v3 }
 0x2fc   :  { %v1130_v5 = vpop.f32.mrb[28].mxu1  ;;  %v1243_v7 = vpop.f32.mrb[44].mxu0 }
 0x2fd   :  { %v1132_v8 = vpop.f32.mrb[29].mxu1  ;;  %v1245_v57 = vpop.f32.mrb[45].mxu0 }
 0x2fe   :  { %v1134_v10 = vpop.f32.mrb[30].mxu1  ;;  %v1247_v11 = vpop.f32.mrb[46].mxu0 }
 0x2ff   :  { %v1534_v12 = vmax.f32 %v1130_v5, %v1134_v10  ;;  %v1536_v14 = vmax.f32 %v1243_v7, %v1247_v11  ;;  %v1136_v16 = vpop.f32.mrb[31].mxu1  ;;  %v1249_v18 = vpop.f32.mrb[47].mxu0 }
 0x300   :  { %v1535_v45 = vmax.f32 %v1132_v8, %v1136_v16  ;;  %v1537_v46 = vmax.f32 %v1245_v57, %v1249_v18 }
 0x301   :  { %v1566_v28 = vmax.f32 %v1526_v61, %v1534_v12  ;;  %v1568_v31 = vmax.f32 %v1528_v62, %v1536_v14 }
 0x302   :  { %v1567_v32 = vmax.f32 %v1527_v51, %v1535_v45  ;;  %v1569_v33 = vmax.f32 %v1529_v4, %v1537_v46 }
 0x303   :  { %v1582_v29 = vmax.f32 %v1558_v63, %v1566_v28  ;;  %v1584_v49 = vmax.f32 %v1560_v39, %v1568_v31 }
 0x304   :  { %v1583_v50 = vmax.f32 %v1559_v40, %v1567_v32  ;;  %v1585_v53 = vmax.f32 %v1561_v42, %v1569_v33  ;;  %v1286_v56 = vpop.f32.mrb[32].mxu1  ;;  %v1399_v60 = vpop.f32.mrb[48].mxu0 }
 0x305   :  { %v1590_v0 = vmax.f32 %v1574_v52, %v1582_v29  ;;  %v1592_v6 = vmax.f32 %v1576_v25, %v1584_v49  ;;  %v1288_v9 = vpop.f32.mrb[33].mxu1  ;;  %v1401_v13 = vpop.f32.mrb[49].mxu0 }
 0x306   :  { %v1591_v17 = vmax.f32 %v1575_v26, %v1583_v50  ;;  %v1593_v20 = vmax.f32 %v1577_v15, %v1585_v53  ;;  %v1290_v23 = vpop.f32.mrb[34].mxu1  ;;  %v1403_v27 = vpop.f32.mrb[50].mxu0 }
 0x307   :  { %v1482_v30 = vmax.f32 %v1286_v56, %v1290_v23  ;;  %v1484_v34 = vmax.f32 %v1399_v60, %v1403_v27  ;;  %v1292_v43 = vpop.f32.mrb[35].mxu1  ;;  %v1405_v19 = vpop.f32.mrb[51].mxu0  ;;  %1614 = vst [vmem:[%s2555_s6] sm:$0xff] %v1590_v0  ;;  %1616 = vst [vmem:[%s2555_s6 + $0x10] sm:$0xff] %v1592_v6 }
 0x308   :  { %v1483_v52 = vmax.f32 %v1288_v9, %v1292_v43  ;;  %v1485_v35 = vmax.f32 %v1401_v13, %v1405_v19  ;;  %1615 = vst [vmem:[%s2555_s6 + $0x8] sm:$0xff] %v1591_v17  ;;  %1617 = vst [vmem:[%s2555_s6 + $0x18] sm:$0xff] %v1593_v20 }
 0x30c   :  { %v1296_v44 = vpop.f32.mrb[36].mxu1  ;;  %v1409_v47 = vpop.f32.mrb[52].mxu0 }
 0x30d   :  { %v1298_v48 = vpop.f32.mrb[37].mxu1  ;;  %v1411_v21 = vpop.f32.mrb[53].mxu0 }
 0x30e   :  { %v1300_v22 = vpop.f32.mrb[38].mxu1  ;;  %v1413_v24 = vpop.f32.mrb[54].mxu0 }
 0x30f   :  { %v1490_v25 = vmax.f32 %v1296_v44, %v1300_v22  ;;  %v1492_v26 = vmax.f32 %v1409_v47, %v1413_v24  ;;  %v1302_v15 = vpop.f32.mrb[39].mxu1  ;;  %v1415_v36 = vpop.f32.mrb[55].mxu0 }
 0x310   :  { %v1491_v1 = vmax.f32 %v1298_v48, %v1302_v15  ;;  %v1493_v37 = vmax.f32 %v1411_v21, %v1415_v36 }
 0x311   :  { %v2513_v63 = vmax.f32 %v1482_v30, %v1490_v25  ;;  %v2515_v39 = vmax.f32 %v1484_v34, %v1492_v26 }
 0x312   :  { %v2517_v40 = vmax.f32 %v1483_v52, %v1491_v1  ;;  %v2519_v42 = vmax.f32 %v1485_v35, %v1493_v37 }
 0x314   :  { %v1306_v54 = vpop.f32.mrb[40].mxu1  ;;  %v1419_v55 = vpop.f32.mrb[56].mxu0 }
 0x315   :  { %v1308_v38 = vpop.f32.mrb[41].mxu1  ;;  %v1421_v41 = vpop.f32.mrb[57].mxu0 }
 0x316   :  { %v1310_v58 = vpop.f32.mrb[42].mxu1  ;;  %v1423_v59 = vpop.f32.mrb[58].mxu0 }
 0x317   :  { %v1498_v61 = vmax.f32 %v1306_v54, %v1310_v58  ;;  %v1500_v62 = vmax.f32 %v1419_v55, %v1423_v59  ;;  %v1312_v2 = vpop.f32.mrb[43].mxu1  ;;  %v1425_v3 = vpop.f32.mrb[59].mxu0 }
 0x318   :  { %v1499_v51 = vmax.f32 %v1308_v38, %v1312_v2  ;;  %v1501_v4 = vmax.f32 %v1421_v41, %v1425_v3 }
 0x31c   :  { %v1316_v5 = vpop.f32.mrb[44].mxu1  ;;  %v1429_v7 = vpop.f32.mrb[60].mxu0 }
 0x31d   :  { %v1318_v8 = vpop.f32.mrb[45].mxu1  ;;  %v1431_v57 = vpop.f32.mrb[61].mxu0 }
 0x31e   :  { %v1320_v10 = vpop.f32.mrb[46].mxu1  ;;  %v1433_v11 = vpop.f32.mrb[62].mxu0 }
 0x31f   :  { %v1506_v12 = vmax.f32 %v1316_v5, %v1320_v10  ;;  %v1508_v14 = vmax.f32 %v1429_v7, %v1433_v11  ;;  %v1322_v16 = vpop.f32.mrb[47].mxu1  ;;  %v1435_v18 = vpop.f32.mrb[63].mxu0 }
 0x320   :  { %v1507_v45 = vmax.f32 %v1318_v8, %v1322_v16  ;;  %v1509_v46 = vmax.f32 %v1431_v57, %v1435_v18 }
 0x321   :  { %v1554_v28 = vmax.f32 %v1498_v61, %v1506_v12  ;;  %v2521_v31 = vmax.f32 %v1500_v62, %v1508_v14 }
 0x322   :  { %v1555_v32 = vmax.f32 %v1499_v51, %v1507_v45  ;;  %v2523_v33 = vmax.f32 %v1501_v4, %v1509_v46 }
 0x323   :  { %v1578_v29 = vmax.f32 %v2513_v63, %v1554_v28  ;;  %v1580_v49 = vmax.f32 %v2515_v39, %v2521_v31 }
 0x324   :  { %v1579_v50 = vmax.f32 %v2517_v40, %v1555_v32  ;;  %v1581_v53 = vmax.f32 %v2519_v42, %v2523_v33  ;;  %v1326_v56 = vpop.f32.mrb[48].mxu1  ;;  %v1439_v60 = vpop.f32.mrb[64].mxu0 }
 0x325   :  { %v1328_v0 = vpop.f32.mrb[49].mxu1  ;;  %v1441_v6 = vpop.f32.mrb[65].mxu0 }
 0x326   :  { %v1330_v9 = vpop.f32.mrb[50].mxu1  ;;  %v1443_v13 = vpop.f32.mrb[66].mxu0 }
 0x327   :  { %v1514_v17 = vmax.f32 %v1326_v56, %v1330_v9  ;;  %v1516_v20 = vmax.f32 %v1439_v60, %v1443_v13  ;;  %v1332_v23 = vpop.f32.mrb[51].mxu1  ;;  %v1445_v27 = vpop.f32.mrb[67].mxu0 }
 0x328   :  { %v1515_v30 = vmax.f32 %v1328_v0, %v1332_v23  ;;  %v1517_v34 = vmax.f32 %v1441_v6, %v1445_v27 }
 0x32c   :  { %v1336_v43 = vpop.f32.mrb[52].mxu1  ;;  %v1449_v19 = vpop.f32.mrb[68].mxu0 }
 0x32d   :  { %v1338_v52 = vpop.f32.mrb[53].mxu1  ;;  %v1451_v35 = vpop.f32.mrb[69].mxu0 }
 0x32e   :  { %v1340_v44 = vpop.f32.mrb[54].mxu1  ;;  %v1453_v47 = vpop.f32.mrb[70].mxu0 }
 0x32f   :  { %v1522_v48 = vmax.f32 %v1336_v43, %v1340_v44  ;;  %v1524_v21 = vmax.f32 %v1449_v19, %v1453_v47  ;;  %v1342_v22 = vpop.f32.mrb[55].mxu1  ;;  %v1455_v24 = vpop.f32.mrb[71].mxu0 }
 0x330   :  { %v1523_v25 = vmax.f32 %v1338_v52, %v1342_v22  ;;  %v1525_v26 = vmax.f32 %v1451_v35, %v1455_v24 }
 0x331   :  { %v1562_v15 = vmax.f32 %v1514_v17, %v1522_v48  ;;  %v1564_v36 = vmax.f32 %v1516_v20, %v1524_v21 }
 0x332   :  { %v1563_v1 = vmax.f32 %v1515_v30, %v1523_v25  ;;  %v1565_v37 = vmax.f32 %v1517_v34, %v1525_v26 }
 0x334   :  { %v1346_v63 = vpop.f32.mrb[56].mxu1  ;;  %v1459_v40 = vpop.f32.mrb[72].mxu0 }
 0x335   :  { %v1348_v54 = vpop.f32.mrb[57].mxu1  ;;  %v1461_v55 = vpop.f32.mrb[73].mxu0 }
 0x336   :  { %v1350_v38 = vpop.f32.mrb[58].mxu1  ;;  %v1463_v41 = vpop.f32.mrb[74].mxu0 }
 0x337   :  { %v1530_v58 = vmax.f32 %v1346_v63, %v1350_v38  ;;  %v1532_v59 = vmax.f32 %v1459_v40, %v1463_v41  ;;  %v1352_v61 = vpop.f32.mrb[59].mxu1  ;;  %v1465_v62 = vpop.f32.mrb[75].mxu0 }
 0x338   :  { %v1531_v2 = vmax.f32 %v1348_v54, %v1352_v61  ;;  %v1533_v3 = vmax.f32 %v1461_v55, %v1465_v62 }
 0x33c   :  { %v1356_v51 = vpop.f32.mrb[60].mxu1 }
 0x33d   :  { %v1358_v4 = vpop.f32.mrb[61].mxu1 }
 0x33e   :  { %v1360_v5 = vpop.f32.mrb[62].mxu1 }
 0x33f   :  { %v1538_v7 = vmax.f32 %v1356_v51, %v1360_v5  ;;  %v1362_v8 = vpop.f32.mrb[63].mxu1 }
 0x340   :  { %v1539_v57 = vmax.f32 %v1358_v4, %v1362_v8 }
 0x341   :  { %v1570_v10 = vmax.f32 %v1530_v58, %v1538_v7 }
 0x342   :  { %v1571_v11 = vmax.f32 %v1531_v2, %v1539_v57 }
 0x343   :  { %v1586_v12 = vmax.f32 %v1562_v15, %v1570_v10 }
 0x344   :  { %v1587_v14 = vmax.f32 %v1563_v1, %v1571_v11  ;;  %v1469_v16 = vpop.f32.mrb[64].mxu1 }
 0x345   :  { %v1594_v18 = vmax.f32 %v1578_v29, %v1586_v12  ;;  %v1471_v45 = vpop.f32.mrb[65].mxu1 }
 0x346   :  { %v1595_v46 = vmax.f32 %v1579_v50, %v1587_v14  ;;  %v1473_v28 = vpop.f32.mrb[66].mxu1 }
 0x347   :  { %v1540_v32 = vmax.f32 %v1469_v16, %v1473_v28  ;;  %v1475_v56 = vpop.f32.mrb[67].mxu1  ;;  %1618 = vst [vmem:[%s2555_s6 + $0x20] sm:$0xff] %v1594_v18 }
 0x348   :  { %v1541_v60 = vmax.f32 %v1471_v45, %v1475_v56  ;;  %1619 = vst [vmem:[%s2555_s6 + $0x28] sm:$0xff] %v1595_v46 }
 0x349   :  { %v1572_v0 = vmax.f32 %v1532_v59, %v1540_v32 }
 0x34a   :  { %v1573_v6 = vmax.f32 %v1533_v3, %v1541_v60 }
 0x34b   :  { %v1588_v9 = vmax.f32 %v1564_v36, %v1572_v0 }
 0x34c   :  { %v1589_v13 = vmax.f32 %v1565_v37, %v1573_v6 }
 0x34d   :  { %v1596_v29 = vmax.f32 %v1580_v49, %v1588_v9 }
 0x34e   :  { %v1597_v50 = vmax.f32 %v1581_v53, %v1589_v13 }
 0x34f   :  { %1620 = vst [vmem:[%s2555_s6 + $0x30] sm:$0xff] %v1596_v29 }
 0x350   :  { %1621 = vst [vmem:[%s2555_s6 + $0x38] sm:$0xff] %v1597_v50 }
 0x351   :  { %1626 = vsyncpa [#allocation3], 1 }
 0x352   :  { %1627 = vsyncpa [#allocation5], 1 }

</bundles_post_ra>
